<compile_context>
chip_gen: v5e
topology: v5e:2x2
jax: 0.10.0
libtpu: 0.0.40
codegen_flags: <defaults>
</compile_context>

<pallas_src>
import functools

import numpy as np
import jax
import jax.numpy as jnp
from jax import lax
from jax.experimental import pallas as pl
from jax.experimental.pallas import tpu as pltpu

BN_EPS = 1e-5


# ----------------------------------------------------------------------------- helpers
def _conv_out(n, k, s, p):
    return (n + 2 * p - k) // s + 1


def _selection_matrices(batch, h_in, w_in, h_out, w_out, k, stride, pad):
    """(k*k, B*h_out*w_out, B*h_in*w_in) 0/1 gather matrices.

    Row m_out of S[t] selects the input row feeding tap t of output position m_out;
    out-of-bounds taps are all-zero rows, i.e. zero padding comes for free.
    Built once per (static) shape with numpy -> embedded as constants under jit.
    """
    m_out, m_in = batch * h_out * w_out, batch * h_in * w_in
    sel = np.zeros((k * k, m_out, m_in), np.float32)
    for di in range(k):
        for dj in range(k):
            t = di * k + dj
            for b in range(batch):
                for i in range(h_out):
                    hi = i * stride + di - pad
                    if not (0 <= hi < h_in):
                        continue
                    for j in range(w_out):
                        wi = j * stride + dj - pad
                        if 0 <= wi < w_in:
                            sel[t, (b * h_out + i) * w_out + j,
                                (b * h_in + hi) * w_in + wi] = 1.0
    return sel


# ----------------------------------------------------------------------------- kernel
def _fused_cnn_kernel(p1_ref, s2_ref, s3_ref, w1_ref, w2_ref, w3_ref,
                      bn1_ref, bn2_ref, bn3_ref, pool_ref, fc_ref, o_ref):
    """Entire CNNFeatureExtractor forward, VMEM-resident.

    p1:(M1,25) conv1 im2col patches; s2:(9,M2,M1), s3:(9,M3,M2) tap-selection matrices;
    w1:(25,16), w2:(9,16,32), w3:(9,32,64); bn_l:(3,C_l)=[bias;gamma;beta];
    pool:(B,M3) spatial-mean matrix; fc:(C3+1,F)=[W^T;b]; o:(B,F).
    """

    def conv_epilogue(y, bn):
        # conv bias + ReLU, then train-mode BatchNorm with batch statistics
        # (per-channel over all M = B*H*W rows, biased variance, eps=1e-5).
        y = jnp.maximum(y + bn[0:1, :], 0.0)
        mean = jnp.mean(y, axis=0, keepdims=True)
        var = jnp.mean((y - mean) * (y - mean), axis=0, keepdims=True)
        return (y - mean) * (bn[1:2, :] * lax.rsqrt(var + BN_EPS)) + bn[2:3, :]

    # ---- layer 1: patches already im2col'ed -> one (M1,25)@(25,16) matmul.
    a = conv_epilogue(
        jnp.dot(p1_ref[...], w1_ref[...], preferred_element_type=jnp.float32),
        bn1_ref[...])

    # ---- layers 2 & 3: per-tap in-kernel im2col (selection matmul) + weight matmul.
    for s_ref, w_ref, bn_ref in ((s2_ref, w2_ref, bn2_ref),
                                 (s3_ref, w3_ref, bn3_ref)):
        sel = s_ref[...]            # (k*k, M_out, M_in)
        wgt = w_ref[...]            # (k*k, C_in, C_out)
        bn = bn_ref[...]            # (3, C_out)
        y = None
        for t in range(sel.shape[0]):                       # static 9-tap loop
            win = jnp.dot(sel[t], a, preferred_element_type=jnp.float32)
            contrib = jnp.dot(win, wgt[t], preferred_element_type=jnp.float32)
            y = contrib if y is None else y + contrib
        a = conv_epilogue(y, bn)

    # ---- AdaptiveAvgPool2d((1,1)) + Linear, fused epilogue.
    fc = fc_ref[...]                                        # (C3+1, F)
    c3 = fc.shape[0] - 1
    pooled = jnp.dot(pool_ref[...], a, preferred_element_type=jnp.float32)   # (B, C3)
    o_ref[...] = jnp.dot(pooled, fc[0:c3, :],
                         preferred_element_type=jnp.float32) + fc[c3:c3 + 1, :]


# ----------------------------------------------------------------------------- model
def init_params(key, feature_dim=12):
    ks = jax.random.split(key, 8)
    p = {}
    # conv1: 1 -> 16, k=5 ; conv2: 16 -> 32, k=3 ; conv3: 32 -> 64, k=3
    p["w1"] = 0.1 * jax.random.normal(ks[0], (16, 1, 5, 5), jnp.float32)
    p["b1"] = 0.1 * jax.random.normal(ks[1], (16,), jnp.float32)
    p["g1"], p["be1"] = jnp.ones((16,), jnp.float32), jnp.zeros((16,), jnp.float32)
    p["w2"] = 0.1 * jax.random.normal(ks[2], (32, 16, 3, 3), jnp.float32)
    p["b2"] = 0.1 * jax.random.normal(ks[3], (32,), jnp.float32)
    p["g2"], p["be2"] = jnp.ones((32,), jnp.float32), jnp.zeros((32,), jnp.float32)
    p["w3"] = 0.1 * jax.random.normal(ks[4], (64, 32, 3, 3), jnp.float32)
    p["b3"] = 0.1 * jax.random.normal(ks[5], (64,), jnp.float32)
    p["g3"], p["be3"] = jnp.ones((64,), jnp.float32), jnp.zeros((64,), jnp.float32)
    p["wfc"] = 0.1 * jax.random.normal(ks[6], (feature_dim, 64), jnp.float32)
    p["bfc"] = 0.1 * jax.random.normal(ks[7], (feature_dim,), jnp.float32)
    return p


@jax.jit
def cnn_feature_extractor(x_nchw, params):
    f32 = jnp.float32
    B, _, H, W = x_nchw.shape                              # module fixes C_in = 1
    H1, W1 = _conv_out(H, 5, 2, 2), _conv_out(W, 5, 2, 2)
    H2, W2 = _conv_out(H1, 3, 2, 1), _conv_out(W1, 3, 2, 1)
    H3, W3 = _conv_out(H2, 3, 2, 1), _conv_out(W2, 3, 2, 1)
    F_dim = params["wfc"].shape[0]

    # ---- conv1 im2col on the raw network input only (~k*k*B*H1*W1 floats).
    xp = jnp.pad(x_nchw[:, 0, :, :].astype(f32), ((0, 0), (2, 2), (2, 2)))
    cols = [xp[:, di:di + 2 * H1:2, dj:dj + 2 * W1:2]
            for di in range(5) for dj in range(5)]
    p1 = jnp.stack(cols, axis=-1).reshape(B * H1 * W1, 25)   # rows ordered (b, i, j)

    # ---- compile-time constant gather / pooling matrices (numpy -> constants).
    s2 = jnp.asarray(_selection_matrices(B, H1, W1, H2, W2, 3, 2, 1))   # (9, M2, M1)
    s3 = jnp.asarray(_selection_matrices(B, H2, W2, H3, W3, 3, 2, 1))   # (9, M3, M2)
    pool = jnp.asarray(np.kron(np.eye(B, dtype=np.float32),
                               np.full((1, H3 * W3), 1.0 / (H3 * W3), np.float32)))

    # ---- weights in matmul form; bias/gamma/beta packed per layer; FC weight+bias packed.
    w1k = jnp.transpose(params["w1"], (2, 3, 1, 0)).reshape(25, 16)
    w2k = jnp.transpose(params["w2"], (2, 3, 1, 0)).reshape(9, 16, 32)
    w3k = jnp.transpose(params["w3"], (2, 3, 1, 0)).reshape(9, 32, 64)
    bn1 = jnp.stack([params["b1"], params["g1"], params["be1"]])        # (3, 16)
    bn2 = jnp.stack([params["b2"], params["g2"], params["be2"]])        # (3, 32)
    bn3 = jnp.stack([params["b3"], params["g3"], params["be3"]])        # (3, 64)
    fck = jnp.concatenate([params["wfc"].T.astype(f32),
                           params["bfc"][None, :].astype(f32)], axis=0)  # (65, F)

    return pl.pallas_call(
        _fused_cnn_kernel,
        out_shape=jax.ShapeDtypeStruct((B, F_dim), f32),
        grid=(1,),
        in_specs=[
            pl.BlockSpec(p1.shape, lambda i: (0, 0)),
            pl.BlockSpec(s2.shape, lambda i: (0, 0, 0)),
            pl.BlockSpec(s3.shape, lambda i: (0, 0, 0)),
            pl.BlockSpec(w1k.shape, lambda i: (0, 0)),
            pl.BlockSpec(w2k.shape, lambda i: (0, 0, 0)),
            pl.BlockSpec(w3k.shape, lambda i: (0, 0, 0)),
            pl.BlockSpec(bn1.shape, lambda i: (0, 0)),
            pl.BlockSpec(bn2.shape, lambda i: (0, 0)),
            pl.BlockSpec(bn3.shape, lambda i: (0, 0)),
            pl.BlockSpec(pool.shape, lambda i: (0, 0)),
            pl.BlockSpec(fck.shape, lambda i: (0, 0)),
        ],
        out_specs=pl.BlockSpec((B, F_dim), lambda i: (0, 0)),
        compiler_params=pltpu.CompilerParams(dimension_semantics=("arbitrary",)),
    )(p1, s2, s3, w1k, w2k, w3k, bn1, bn2, bn3, pool, fck)


if __name__ == "__main__":
    key = jax.random.PRNGKey(0)
    k_x, k_p = jax.random.split(key)
    x = jax.random.normal(k_x, (2, 1, 16, 16), jnp.float32)   # NCHW, 1 input channel
    params = init_params(k_p, feature_dim=12)
    out = cnn_feature_extractor(x, params)
    jax.block_until_ready(out)
    assert out.shape == (2, 12)
    print("KERNEL_OK")
</pallas_src>

<mosaic_0001>
module attributes {stable_mosaic.version = 11 : i64} {
  func.func @_fused_cnn_kernel(%arg0: i32, %arg1: memref<128x25xf32, #tpu.memory_space<vmem>>, %arg2: memref<9x32x128xf32, #tpu.memory_space<vmem>>, %arg3: memref<9x8x32xf32, #tpu.memory_space<vmem>>, %arg4: memref<25x16xf32, #tpu.memory_space<vmem>>, %arg5: memref<9x16x32xf32, #tpu.memory_space<vmem>>, %arg6: memref<9x32x64xf32, #tpu.memory_space<vmem>>, %arg7: memref<3x16xf32, #tpu.memory_space<vmem>>, %arg8: memref<3x32xf32, #tpu.memory_space<vmem>>, %arg9: memref<3x64xf32, #tpu.memory_space<vmem>>, %arg10: memref<2x8xf32, #tpu.memory_space<vmem>>, %arg11: memref<65x12xf32, #tpu.memory_space<vmem>>, %arg12: memref<2x12xf32, #tpu.memory_space<vmem>>) attributes {dimension_semantics = [#tpu.dimension_semantics<arbitrary>], iteration_bounds = array<i64: 1>, scalar_prefetch = 0 : i64, scratch_operands = 0 : i64, tpu.core_type = #tpu.core_type<tc>, window_params = [{pipeline_mode = #tpu.pipeline_mode<synchronous>, transform_indices = @transform_0, window_bounds = array<i64: 128, 25>}, {pipeline_mode = #tpu.pipeline_mode<synchronous>, transform_indices = @transform_1, window_bounds = array<i64: 9, 32, 128>}, {pipeline_mode = #tpu.pipeline_mode<synchronous>, transform_indices = @transform_2, window_bounds = array<i64: 9, 8, 32>}, {pipeline_mode = #tpu.pipeline_mode<synchronous>, transform_indices = @transform_3, window_bounds = array<i64: 25, 16>}, {pipeline_mode = #tpu.pipeline_mode<synchronous>, transform_indices = @transform_4, window_bounds = array<i64: 9, 16, 32>}, {pipeline_mode = #tpu.pipeline_mode<synchronous>, transform_indices = @transform_5, window_bounds = array<i64: 9, 32, 64>}, {pipeline_mode = #tpu.pipeline_mode<synchronous>, transform_indices = @transform_6, window_bounds = array<i64: 3, 16>}, {pipeline_mode = #tpu.pipeline_mode<synchronous>, transform_indices = @transform_7, window_bounds = array<i64: 3, 32>}, {pipeline_mode = #tpu.pipeline_mode<synchronous>, transform_indices = @transform_8, window_bounds = array<i64: 3, 64>}, {pipeline_mode = #tpu.pipeline_mode<synchronous>, transform_indices = @transform_9, window_bounds = array<i64: 2, 8>}, {pipeline_mode = #tpu.pipeline_mode<synchronous>, transform_indices = @transform_10, window_bounds = array<i64: 65, 12>}, {pipeline_mode = #tpu.pipeline_mode<synchronous>, transform_indices = @transform_11, window_bounds = array<i64: 2, 12>}]} {
    %c0 = arith.constant 0 : index
    %c0_0 = arith.constant 0 : index
    %0 = vector.load %arg1[%c0, %c0_0] : memref<128x25xf32, #tpu.memory_space<vmem>>, vector<128x25xf32>
    %c0_1 = arith.constant 0 : index
    %c0_2 = arith.constant 0 : index
    %1 = vector.load %arg4[%c0_1, %c0_2] : memref<25x16xf32, #tpu.memory_space<vmem>>, vector<25x16xf32>
    %cst = arith.constant dense<0.000000e+00> : vector<128x16xf32>
    %2 = tpu.matmul %0, %1, %cst {dimension_numbers = #tpu.dot_dimension_numbers<[1], [0], [0], [1], [0, 0, 1, 1], [], []>} : vector<128x25xf32>, vector<25x16xf32>, vector<128x16xf32> -> vector<128x16xf32>
    %c0_3 = arith.constant 0 : index
    %c0_4 = arith.constant 0 : index
    %3 = vector.load %arg7[%c0_3, %c0_4] : memref<3x16xf32, #tpu.memory_space<vmem>>, vector<3x16xf32>
    %4 = vector.extract_strided_slice %3 {offsets = [0, 0], sizes = [1, 16], strides = [1, 1]} : vector<3x16xf32> to vector<1x16xf32>
    %5 = vector.broadcast %4 : vector<1x16xf32> to vector<128x16xf32>
    %6 = arith.addf %2, %5 : vector<128x16xf32>
    %cst_5 = arith.constant 0.000000e+00 : f32
    %7 = vector.broadcast %cst_5 : f32 to vector<128x16xf32>
    %8 = arith.maximumf %6, %7 : vector<128x16xf32>
    %cst_6 = arith.constant dense<0.000000e+00> : vector<16xf32>
    %9 = vector.multi_reduction <add>, %8, %cst_6 [0] : vector<128x16xf32> to vector<16xf32>
    %10 = vector.shape_cast %9 : vector<16xf32> to vector<1x16xf32>
    %cst_7 = arith.constant 1.280000e+02 : f32
    %11 = vector.broadcast %cst_7 : f32 to vector<1x16xf32>
    %12 = arith.divf %10, %11 : vector<1x16xf32>
    %13 = vector.broadcast %12 : vector<1x16xf32> to vector<128x16xf32>
    %14 = arith.subf %8, %13 : vector<128x16xf32>
    %15 = vector.broadcast %12 : vector<1x16xf32> to vector<128x16xf32>
    %16 = arith.subf %8, %15 : vector<128x16xf32>
    %17 = arith.mulf %14, %16 : vector<128x16xf32>
    %cst_8 = arith.constant dense<0.000000e+00> : vector<16xf32>
    %18 = vector.multi_reduction <add>, %17, %cst_8 [0] : vector<128x16xf32> to vector<16xf32>
    %19 = vector.shape_cast %18 : vector<16xf32> to vector<1x16xf32>
    %cst_9 = arith.constant 1.280000e+02 : f32
    %20 = vector.broadcast %cst_9 : f32 to vector<1x16xf32>
    %21 = arith.divf %19, %20 : vector<1x16xf32>
    %22 = vector.broadcast %12 : vector<1x16xf32> to vector<128x16xf32>
    %23 = arith.subf %8, %22 : vector<128x16xf32>
    %24 = vector.extract_strided_slice %3 {offsets = [1, 0], sizes = [1, 16], strides = [1, 1]} : vector<3x16xf32> to vector<1x16xf32>
    %cst_10 = arith.constant 9.99999974E-6 : f32
    %25 = vector.broadcast %cst_10 : f32 to vector<1x16xf32>
    %26 = arith.addf %21, %25 : vector<1x16xf32>
    %27 = math.rsqrt %26 : vector<1x16xf32>
    %28 = arith.mulf %24, %27 : vector<1x16xf32>
    %29 = vector.broadcast %28 : vector<1x16xf32> to vector<128x16xf32>
    %30 = arith.mulf %23, %29 : vector<128x16xf32>
    %31 = vector.extract_strided_slice %3 {offsets = [2, 0], sizes = [1, 16], strides = [1, 1]} : vector<3x16xf32> to vector<1x16xf32>
    %32 = vector.broadcast %31 : vector<1x16xf32> to vector<128x16xf32>
    %33 = arith.addf %30, %32 : vector<128x16xf32>
    %c0_11 = arith.constant 0 : index
    %c0_12 = arith.constant 0 : index
    %c0_13 = arith.constant 0 : index
    %34 = vector.load %arg2[%c0_11, %c0_12, %c0_13] : memref<9x32x128xf32, #tpu.memory_space<vmem>>, vector<9x32x128xf32>
    %c0_14 = arith.constant 0 : index
    %c0_15 = arith.constant 0 : index
    %c0_16 = arith.constant 0 : index
    %35 = vector.load %arg5[%c0_14, %c0_15, %c0_16] : memref<9x16x32xf32, #tpu.memory_space<vmem>>, vector<9x16x32xf32>
    %c0_17 = arith.constant 0 : index
    %c0_18 = arith.constant 0 : index
    %36 = vector.load %arg8[%c0_17, %c0_18] : memref<3x32xf32, #tpu.memory_space<vmem>>, vector<3x32xf32>
    %37 = vector.extract_strided_slice %34 {offsets = [0, 0, 0], sizes = [1, 32, 128], strides = [1, 1, 1]} : vector<9x32x128xf32> to vector<1x32x128xf32>
    %38 = vector.shape_cast %37 : vector<1x32x128xf32> to vector<32x128xf32>
    %cst_19 = arith.constant dense<0.000000e+00> : vector<32x16xf32>
    %39 = tpu.matmul %38, %33, %cst_19 {dimension_numbers = #tpu.dot_dimension_numbers<[1], [0], [0], [1], [0, 0, 1, 1], [], []>} : vector<32x128xf32>, vector<128x16xf32>, vector<32x16xf32> -> vector<32x16xf32>
    %40 = vector.extract_strided_slice %35 {offsets = [0, 0, 0], sizes = [1, 16, 32], strides = [1, 1, 1]} : vector<9x16x32xf32> to vector<1x16x32xf32>
    %41 = vector.shape_cast %40 : vector<1x16x32xf32> to vector<16x32xf32>
    %cst_20 = arith.constant dense<0.000000e+00> : vector<32x32xf32>
    %42 = tpu.matmul %39, %41, %cst_20 {dimension_numbers = #tpu.dot_dimension_numbers<[1], [0], [0], [1], [0, 0, 1, 1], [], []>} : vector<32x16xf32>, vector<16x32xf32>, vector<32x32xf32> -> vector<32x32xf32>
    %43 = vector.extract_strided_slice %34 {offsets = [1, 0, 0], sizes = [1, 32, 128], strides = [1, 1, 1]} : vector<9x32x128xf32> to vector<1x32x128xf32>
    %44 = vector.shape_cast %43 : vector<1x32x128xf32> to vector<32x128xf32>
    %cst_21 = arith.constant dense<0.000000e+00> : vector<32x16xf32>
    %45 = tpu.matmul %44, %33, %cst_21 {dimension_numbers = #tpu.dot_dimension_numbers<[1], [0], [0], [1], [0, 0, 1, 1], [], []>} : vector<32x128xf32>, vector<128x16xf32>, vector<32x16xf32> -> vector<32x16xf32>
    %46 = vector.extract_strided_slice %35 {offsets = [1, 0, 0], sizes = [1, 16, 32], strides = [1, 1, 1]} : vector<9x16x32xf32> to vector<1x16x32xf32>
    %47 = vector.shape_cast %46 : vector<1x16x32xf32> to vector<16x32xf32>
    %cst_22 = arith.constant dense<0.000000e+00> : vector<32x32xf32>
    %48 = tpu.matmul %45, %47, %cst_22 {dimension_numbers = #tpu.dot_dimension_numbers<[1], [0], [0], [1], [0, 0, 1, 1], [], []>} : vector<32x16xf32>, vector<16x32xf32>, vector<32x32xf32> -> vector<32x32xf32>
    %49 = arith.addf %42, %48 : vector<32x32xf32>
    %50 = vector.extract_strided_slice %34 {offsets = [2, 0, 0], sizes = [1, 32, 128], strides = [1, 1, 1]} : vector<9x32x128xf32> to vector<1x32x128xf32>
    %51 = vector.shape_cast %50 : vector<1x32x128xf32> to vector<32x128xf32>
    %cst_23 = arith.constant dense<0.000000e+00> : vector<32x16xf32>
    %52 = tpu.matmul %51, %33, %cst_23 {dimension_numbers = #tpu.dot_dimension_numbers<[1], [0], [0], [1], [0, 0, 1, 1], [], []>} : vector<32x128xf32>, vector<128x16xf32>, vector<32x16xf32> -> vector<32x16xf32>
    %53 = vector.extract_strided_slice %35 {offsets = [2, 0, 0], sizes = [1, 16, 32], strides = [1, 1, 1]} : vector<9x16x32xf32> to vector<1x16x32xf32>
    %54 = vector.shape_cast %53 : vector<1x16x32xf32> to vector<16x32xf32>
    %cst_24 = arith.constant dense<0.000000e+00> : vector<32x32xf32>
    %55 = tpu.matmul %52, %54, %cst_24 {dimension_numbers = #tpu.dot_dimension_numbers<[1], [0], [0], [1], [0, 0, 1, 1], [], []>} : vector<32x16xf32>, vector<16x32xf32>, vector<32x32xf32> -> vector<32x32xf32>
    %56 = arith.addf %49, %55 : vector<32x32xf32>
    %57 = vector.extract_strided_slice %34 {offsets = [3, 0, 0], sizes = [1, 32, 128], strides = [1, 1, 1]} : vector<9x32x128xf32> to vector<1x32x128xf32>
    %58 = vector.shape_cast %57 : vector<1x32x128xf32> to vector<32x128xf32>
    %cst_25 = arith.constant dense<0.000000e+00> : vector<32x16xf32>
    %59 = tpu.matmul %58, %33, %cst_25 {dimension_numbers = #tpu.dot_dimension_numbers<[1], [0], [0], [1], [0, 0, 1, 1], [], []>} : vector<32x128xf32>, vector<128x16xf32>, vector<32x16xf32> -> vector<32x16xf32>
    %60 = vector.extract_strided_slice %35 {offsets = [3, 0, 0], sizes = [1, 16, 32], strides = [1, 1, 1]} : vector<9x16x32xf32> to vector<1x16x32xf32>
    %61 = vector.shape_cast %60 : vector<1x16x32xf32> to vector<16x32xf32>
    %cst_26 = arith.constant dense<0.000000e+00> : vector<32x32xf32>
    %62 = tpu.matmul %59, %61, %cst_26 {dimension_numbers = #tpu.dot_dimension_numbers<[1], [0], [0], [1], [0, 0, 1, 1], [], []>} : vector<32x16xf32>, vector<16x32xf32>, vector<32x32xf32> -> vector<32x32xf32>
    %63 = arith.addf %56, %62 : vector<32x32xf32>
    %64 = vector.extract_strided_slice %34 {offsets = [4, 0, 0], sizes = [1, 32, 128], strides = [1, 1, 1]} : vector<9x32x128xf32> to vector<1x32x128xf32>
    %65 = vector.shape_cast %64 : vector<1x32x128xf32> to vector<32x128xf32>
    %cst_27 = arith.constant dense<0.000000e+00> : vector<32x16xf32>
    %66 = tpu.matmul %65, %33, %cst_27 {dimension_numbers = #tpu.dot_dimension_numbers<[1], [0], [0], [1], [0, 0, 1, 1], [], []>} : vector<32x128xf32>, vector<128x16xf32>, vector<32x16xf32> -> vector<32x16xf32>
    %67 = vector.extract_strided_slice %35 {offsets = [4, 0, 0], sizes = [1, 16, 32], strides = [1, 1, 1]} : vector<9x16x32xf32> to vector<1x16x32xf32>
    %68 = vector.shape_cast %67 : vector<1x16x32xf32> to vector<16x32xf32>
    %cst_28 = arith.constant dense<0.000000e+00> : vector<32x32xf32>
    %69 = tpu.matmul %66, %68, %cst_28 {dimension_numbers = #tpu.dot_dimension_numbers<[1], [0], [0], [1], [0, 0, 1, 1], [], []>} : vector<32x16xf32>, vector<16x32xf32>, vector<32x32xf32> -> vector<32x32xf32>
    %70 = arith.addf %63, %69 : vector<32x32xf32>
    %71 = vector.extract_strided_slice %34 {offsets = [5, 0, 0], sizes = [1, 32, 128], strides = [1, 1, 1]} : vector<9x32x128xf32> to vector<1x32x128xf32>
    %72 = vector.shape_cast %71 : vector<1x32x128xf32> to vector<32x128xf32>
    %cst_29 = arith.constant dense<0.000000e+00> : vector<32x16xf32>
    %73 = tpu.matmul %72, %33, %cst_29 {dimension_numbers = #tpu.dot_dimension_numbers<[1], [0], [0], [1], [0, 0, 1, 1], [], []>} : vector<32x128xf32>, vector<128x16xf32>, vector<32x16xf32> -> vector<32x16xf32>
    %74 = vector.extract_strided_slice %35 {offsets = [5, 0, 0], sizes = [1, 16, 32], strides = [1, 1, 1]} : vector<9x16x32xf32> to vector<1x16x32xf32>
    %75 = vector.shape_cast %74 : vector<1x16x32xf32> to vector<16x32xf32>
    %cst_30 = arith.constant dense<0.000000e+00> : vector<32x32xf32>
    %76 = tpu.matmul %73, %75, %cst_30 {dimension_numbers = #tpu.dot_dimension_numbers<[1], [0], [0], [1], [0, 0, 1, 1], [], []>} : vector<32x16xf32>, vector<16x32xf32>, vector<32x32xf32> -> vector<32x32xf32>
    %77 = arith.addf %70, %76 : vector<32x32xf32>
    %78 = vector.extract_strided_slice %34 {offsets = [6, 0, 0], sizes = [1, 32, 128], strides = [1, 1, 1]} : vector<9x32x128xf32> to vector<1x32x128xf32>
    %79 = vector.shape_cast %78 : vector<1x32x128xf32> to vector<32x128xf32>
    %cst_31 = arith.constant dense<0.000000e+00> : vector<32x16xf32>
    %80 = tpu.matmul %79, %33, %cst_31 {dimension_numbers = #tpu.dot_dimension_numbers<[1], [0], [0], [1], [0, 0, 1, 1], [], []>} : vector<32x128xf32>, vector<128x16xf32>, vector<32x16xf32> -> vector<32x16xf32>
    %81 = vector.extract_strided_slice %35 {offsets = [6, 0, 0], sizes = [1, 16, 32], strides = [1, 1, 1]} : vector<9x16x32xf32> to vector<1x16x32xf32>
    %82 = vector.shape_cast %81 : vector<1x16x32xf32> to vector<16x32xf32>
    %cst_32 = arith.constant dense<0.000000e+00> : vector<32x32xf32>
    %83 = tpu.matmul %80, %82, %cst_32 {dimension_numbers = #tpu.dot_dimension_numbers<[1], [0], [0], [1], [0, 0, 1, 1], [], []>} : vector<32x16xf32>, vector<16x32xf32>, vector<32x32xf32> -> vector<32x32xf32>
    %84 = arith.addf %77, %83 : vector<32x32xf32>
    %85 = vector.extract_strided_slice %34 {offsets = [7, 0, 0], sizes = [1, 32, 128], strides = [1, 1, 1]} : vector<9x32x128xf32> to vector<1x32x128xf32>
    %86 = vector.shape_cast %85 : vector<1x32x128xf32> to vector<32x128xf32>
    %cst_33 = arith.constant dense<0.000000e+00> : vector<32x16xf32>
    %87 = tpu.matmul %86, %33, %cst_33 {dimension_numbers = #tpu.dot_dimension_numbers<[1], [0], [0], [1], [0, 0, 1, 1], [], []>} : vector<32x128xf32>, vector<128x16xf32>, vector<32x16xf32> -> vector<32x16xf32>
    %88 = vector.extract_strided_slice %35 {offsets = [7, 0, 0], sizes = [1, 16, 32], strides = [1, 1, 1]} : vector<9x16x32xf32> to vector<1x16x32xf32>
    %89 = vector.shape_cast %88 : vector<1x16x32xf32> to vector<16x32xf32>
    %cst_34 = arith.constant dense<0.000000e+00> : vector<32x32xf32>
    %90 = tpu.matmul %87, %89, %cst_34 {dimension_numbers = #tpu.dot_dimension_numbers<[1], [0], [0], [1], [0, 0, 1, 1], [], []>} : vector<32x16xf32>, vector<16x32xf32>, vector<32x32xf32> -> vector<32x32xf32>
    %91 = arith.addf %84, %90 : vector<32x32xf32>
    %92 = vector.extract_strided_slice %34 {offsets = [8, 0, 0], sizes = [1, 32, 128], strides = [1, 1, 1]} : vector<9x32x128xf32> to vector<1x32x128xf32>
    %93 = vector.shape_cast %92 : vector<1x32x128xf32> to vector<32x128xf32>
    %cst_35 = arith.constant dense<0.000000e+00> : vector<32x16xf32>
    %94 = tpu.matmul %93, %33, %cst_35 {dimension_numbers = #tpu.dot_dimension_numbers<[1], [0], [0], [1], [0, 0, 1, 1], [], []>} : vector<32x128xf32>, vector<128x16xf32>, vector<32x16xf32> -> vector<32x16xf32>
    %95 = vector.extract_strided_slice %35 {offsets = [8, 0, 0], sizes = [1, 16, 32], strides = [1, 1, 1]} : vector<9x16x32xf32> to vector<1x16x32xf32>
    %96 = vector.shape_cast %95 : vector<1x16x32xf32> to vector<16x32xf32>
    %cst_36 = arith.constant dense<0.000000e+00> : vector<32x32xf32>
    %97 = tpu.matmul %94, %96, %cst_36 {dimension_numbers = #tpu.dot_dimension_numbers<[1], [0], [0], [1], [0, 0, 1, 1], [], []>} : vector<32x16xf32>, vector<16x32xf32>, vector<32x32xf32> -> vector<32x32xf32>
    %98 = arith.addf %91, %97 : vector<32x32xf32>
    %99 = vector.extract_strided_slice %36 {offsets = [0, 0], sizes = [1, 32], strides = [1, 1]} : vector<3x32xf32> to vector<1x32xf32>
    %100 = vector.broadcast %99 : vector<1x32xf32> to vector<32x32xf32>
    %101 = arith.addf %98, %100 : vector<32x32xf32>
    %cst_37 = arith.constant 0.000000e+00 : f32
    %102 = vector.broadcast %cst_37 : f32 to vector<32x32xf32>
    %103 = arith.maximumf %101, %102 : vector<32x32xf32>
    %cst_38 = arith.constant dense<0.000000e+00> : vector<32xf32>
    %104 = vector.multi_reduction <add>, %103, %cst_38 [0] : vector<32x32xf32> to vector<32xf32>
    %105 = vector.shape_cast %104 : vector<32xf32> to vector<1x32xf32>
    %cst_39 = arith.constant 3.200000e+01 : f32
    %106 = vector.broadcast %cst_39 : f32 to vector<1x32xf32>
    %107 = arith.divf %105, %106 : vector<1x32xf32>
    %108 = vector.broadcast %107 : vector<1x32xf32> to vector<32x32xf32>
    %109 = arith.subf %103, %108 : vector<32x32xf32>
    %110 = vector.broadcast %107 : vector<1x32xf32> to vector<32x32xf32>
    %111 = arith.subf %103, %110 : vector<32x32xf32>
    %112 = arith.mulf %109, %111 : vector<32x32xf32>
    %cst_40 = arith.constant dense<0.000000e+00> : vector<32xf32>
    %113 = vector.multi_reduction <add>, %112, %cst_40 [0] : vector<32x32xf32> to vector<32xf32>
    %114 = vector.shape_cast %113 : vector<32xf32> to vector<1x32xf32>
    %cst_41 = arith.constant 3.200000e+01 : f32
    %115 = vector.broadcast %cst_41 : f32 to vector<1x32xf32>
    %116 = arith.divf %114, %115 : vector<1x32xf32>
    %117 = vector.broadcast %107 : vector<1x32xf32> to vector<32x32xf32>
    %118 = arith.subf %103, %117 : vector<32x32xf32>
    %119 = vector.extract_strided_slice %36 {offsets = [1, 0], sizes = [1, 32], strides = [1, 1]} : vector<3x32xf32> to vector<1x32xf32>
    %cst_42 = arith.constant 9.99999974E-6 : f32
    %120 = vector.broadcast %cst_42 : f32 to vector<1x32xf32>
    %121 = arith.addf %116, %120 : vector<1x32xf32>
    %122 = math.rsqrt %121 : vector<1x32xf32>
    %123 = arith.mulf %119, %122 : vector<1x32xf32>
    %124 = vector.broadcast %123 : vector<1x32xf32> to vector<32x32xf32>
    %125 = arith.mulf %118, %124 : vector<32x32xf32>
    %126 = vector.extract_strided_slice %36 {offsets = [2, 0], sizes = [1, 32], strides = [1, 1]} : vector<3x32xf32> to vector<1x32xf32>
    %127 = vector.broadcast %126 : vector<1x32xf32> to vector<32x32xf32>
    %128 = arith.addf %125, %127 : vector<32x32xf32>
    %c0_43 = arith.constant 0 : index
    %c0_44 = arith.constant 0 : index
    %c0_45 = arith.constant 0 : index
    %129 = vector.load %arg3[%c0_43, %c0_44, %c0_45] : memref<9x8x32xf32, #tpu.memory_space<vmem>>, vector<9x8x32xf32>
    %c0_46 = arith.constant 0 : index
    %c0_47 = arith.constant 0 : index
    %c0_48 = arith.constant 0 : index
    %130 = vector.load %arg6[%c0_46, %c0_47, %c0_48] : memref<9x32x64xf32, #tpu.memory_space<vmem>>, vector<9x32x64xf32>
    %c0_49 = arith.constant 0 : index
    %c0_50 = arith.constant 0 : index
    %131 = vector.load %arg9[%c0_49, %c0_50] : memref<3x64xf32, #tpu.memory_space<vmem>>, vector<3x64xf32>
    %132 = vector.extract_strided_slice %129 {offsets = [0, 0, 0], sizes = [1, 8, 32], strides = [1, 1, 1]} : vector<9x8x32xf32> to vector<1x8x32xf32>
    %133 = vector.shape_cast %132 : vector<1x8x32xf32> to vector<8x32xf32>
    %cst_51 = arith.constant dense<0.000000e+00> : vector<8x32xf32>
    %134 = tpu.matmul %133, %128, %cst_51 {dimension_numbers = #tpu.dot_dimension_numbers<[1], [0], [0], [1], [0, 0, 1, 1], [], []>} : vector<8x32xf32>, vector<32x32xf32>, vector<8x32xf32> -> vector<8x32xf32>
    %135 = vector.extract_strided_slice %130 {offsets = [0, 0, 0], sizes = [1, 32, 64], strides = [1, 1, 1]} : vector<9x32x64xf32> to vector<1x32x64xf32>
    %136 = vector.shape_cast %135 : vector<1x32x64xf32> to vector<32x64xf32>
    %cst_52 = arith.constant dense<0.000000e+00> : vector<8x64xf32>
    %137 = tpu.matmul %134, %136, %cst_52 {dimension_numbers = #tpu.dot_dimension_numbers<[1], [0], [0], [1], [0, 0, 1, 1], [], []>} : vector<8x32xf32>, vector<32x64xf32>, vector<8x64xf32> -> vector<8x64xf32>
    %138 = vector.extract_strided_slice %129 {offsets = [1, 0, 0], sizes = [1, 8, 32], strides = [1, 1, 1]} : vector<9x8x32xf32> to vector<1x8x32xf32>
    %139 = vector.shape_cast %138 : vector<1x8x32xf32> to vector<8x32xf32>
    %cst_53 = arith.constant dense<0.000000e+00> : vector<8x32xf32>
    %140 = tpu.matmul %139, %128, %cst_53 {dimension_numbers = #tpu.dot_dimension_numbers<[1], [0], [0], [1], [0, 0, 1, 1], [], []>} : vector<8x32xf32>, vector<32x32xf32>, vector<8x32xf32> -> vector<8x32xf32>
    %141 = vector.extract_strided_slice %130 {offsets = [1, 0, 0], sizes = [1, 32, 64], strides = [1, 1, 1]} : vector<9x32x64xf32> to vector<1x32x64xf32>
    %142 = vector.shape_cast %141 : vector<1x32x64xf32> to vector<32x64xf32>
    %cst_54 = arith.constant dense<0.000000e+00> : vector<8x64xf32>
    %143 = tpu.matmul %140, %142, %cst_54 {dimension_numbers = #tpu.dot_dimension_numbers<[1], [0], [0], [1], [0, 0, 1, 1], [], []>} : vector<8x32xf32>, vector<32x64xf32>, vector<8x64xf32> -> vector<8x64xf32>
    %144 = arith.addf %137, %143 : vector<8x64xf32>
    %145 = vector.extract_strided_slice %129 {offsets = [2, 0, 0], sizes = [1, 8, 32], strides = [1, 1, 1]} : vector<9x8x32xf32> to vector<1x8x32xf32>
    %146 = vector.shape_cast %145 : vector<1x8x32xf32> to vector<8x32xf32>
    %cst_55 = arith.constant dense<0.000000e+00> : vector<8x32xf32>
    %147 = tpu.matmul %146, %128, %cst_55 {dimension_numbers = #tpu.dot_dimension_numbers<[1], [0], [0], [1], [0, 0, 1, 1], [], []>} : vector<8x32xf32>, vector<32x32xf32>, vector<8x32xf32> -> vector<8x32xf32>
    %148 = vector.extract_strided_slice %130 {offsets = [2, 0, 0], sizes = [1, 32, 64], strides = [1, 1, 1]} : vector<9x32x64xf32> to vector<1x32x64xf32>
    %149 = vector.shape_cast %148 : vector<1x32x64xf32> to vector<32x64xf32>
    %cst_56 = arith.constant dense<0.000000e+00> : vector<8x64xf32>
    %150 = tpu.matmul %147, %149, %cst_56 {dimension_numbers = #tpu.dot_dimension_numbers<[1], [0], [0], [1], [0, 0, 1, 1], [], []>} : vector<8x32xf32>, vector<32x64xf32>, vector<8x64xf32> -> vector<8x64xf32>
    %151 = arith.addf %144, %150 : vector<8x64xf32>
    %152 = vector.extract_strided_slice %129 {offsets = [3, 0, 0], sizes = [1, 8, 32], strides = [1, 1, 1]} : vector<9x8x32xf32> to vector<1x8x32xf32>
    %153 = vector.shape_cast %152 : vector<1x8x32xf32> to vector<8x32xf32>
    %cst_57 = arith.constant dense<0.000000e+00> : vector<8x32xf32>
    %154 = tpu.matmul %153, %128, %cst_57 {dimension_numbers = #tpu.dot_dimension_numbers<[1], [0], [0], [1], [0, 0, 1, 1], [], []>} : vector<8x32xf32>, vector<32x32xf32>, vector<8x32xf32> -> vector<8x32xf32>
    %155 = vector.extract_strided_slice %130 {offsets = [3, 0, 0], sizes = [1, 32, 64], strides = [1, 1, 1]} : vector<9x32x64xf32> to vector<1x32x64xf32>
    %156 = vector.shape_cast %155 : vector<1x32x64xf32> to vector<32x64xf32>
    %cst_58 = arith.constant dense<0.000000e+00> : vector<8x64xf32>
    %157 = tpu.matmul %154, %156, %cst_58 {dimension_numbers = #tpu.dot_dimension_numbers<[1], [0], [0], [1], [0, 0, 1, 1], [], []>} : vector<8x32xf32>, vector<32x64xf32>, vector<8x64xf32> -> vector<8x64xf32>
    %158 = arith.addf %151, %157 : vector<8x64xf32>
    %159 = vector.extract_strided_slice %129 {offsets = [4, 0, 0], sizes = [1, 8, 32], strides = [1, 1, 1]} : vector<9x8x32xf32> to vector<1x8x32xf32>
    %160 = vector.shape_cast %159 : vector<1x8x32xf32> to vector<8x32xf32>
    %cst_59 = arith.constant dense<0.000000e+00> : vector<8x32xf32>
    %161 = tpu.matmul %160, %128, %cst_59 {dimension_numbers = #tpu.dot_dimension_numbers<[1], [0], [0], [1], [0, 0, 1, 1], [], []>} : vector<8x32xf32>, vector<32x32xf32>, vector<8x32xf32> -> vector<8x32xf32>
    %162 = vector.extract_strided_slice %130 {offsets = [4, 0, 0], sizes = [1, 32, 64], strides = [1, 1, 1]} : vector<9x32x64xf32> to vector<1x32x64xf32>
    %163 = vector.shape_cast %162 : vector<1x32x64xf32> to vector<32x64xf32>
    %cst_60 = arith.constant dense<0.000000e+00> : vector<8x64xf32>
    %164 = tpu.matmul %161, %163, %cst_60 {dimension_numbers = #tpu.dot_dimension_numbers<[1], [0], [0], [1], [0, 0, 1, 1], [], []>} : vector<8x32xf32>, vector<32x64xf32>, vector<8x64xf32> -> vector<8x64xf32>
    %165 = arith.addf %158, %164 : vector<8x64xf32>
    %166 = vector.extract_strided_slice %129 {offsets = [5, 0, 0], sizes = [1, 8, 32], strides = [1, 1, 1]} : vector<9x8x32xf32> to vector<1x8x32xf32>
    %167 = vector.shape_cast %166 : vector<1x8x32xf32> to vector<8x32xf32>
    %cst_61 = arith.constant dense<0.000000e+00> : vector<8x32xf32>
    %168 = tpu.matmul %167, %128, %cst_61 {dimension_numbers = #tpu.dot_dimension_numbers<[1], [0], [0], [1], [0, 0, 1, 1], [], []>} : vector<8x32xf32>, vector<32x32xf32>, vector<8x32xf32> -> vector<8x32xf32>
    %169 = vector.extract_strided_slice %130 {offsets = [5, 0, 0], sizes = [1, 32, 64], strides = [1, 1, 1]} : vector<9x32x64xf32> to vector<1x32x64xf32>
    %170 = vector.shape_cast %169 : vector<1x32x64xf32> to vector<32x64xf32>
    %cst_62 = arith.constant dense<0.000000e+00> : vector<8x64xf32>
    %171 = tpu.matmul %168, %170, %cst_62 {dimension_numbers = #tpu.dot_dimension_numbers<[1], [0], [0], [1], [0, 0, 1, 1], [], []>} : vector<8x32xf32>, vector<32x64xf32>, vector<8x64xf32> -> vector<8x64xf32>
    %172 = arith.addf %165, %171 : vector<8x64xf32>
    %173 = vector.extract_strided_slice %129 {offsets = [6, 0, 0], sizes = [1, 8, 32], strides = [1, 1, 1]} : vector<9x8x32xf32> to vector<1x8x32xf32>
    %174 = vector.shape_cast %173 : vector<1x8x32xf32> to vector<8x32xf32>
    %cst_63 = arith.constant dense<0.000000e+00> : vector<8x32xf32>
    %175 = tpu.matmul %174, %128, %cst_63 {dimension_numbers = #tpu.dot_dimension_numbers<[1], [0], [0], [1], [0, 0, 1, 1], [], []>} : vector<8x32xf32>, vector<32x32xf32>, vector<8x32xf32> -> vector<8x32xf32>
    %176 = vector.extract_strided_slice %130 {offsets = [6, 0, 0], sizes = [1, 32, 64], strides = [1, 1, 1]} : vector<9x32x64xf32> to vector<1x32x64xf32>
    %177 = vector.shape_cast %176 : vector<1x32x64xf32> to vector<32x64xf32>
    %cst_64 = arith.constant dense<0.000000e+00> : vector<8x64xf32>
    %178 = tpu.matmul %175, %177, %cst_64 {dimension_numbers = #tpu.dot_dimension_numbers<[1], [0], [0], [1], [0, 0, 1, 1], [], []>} : vector<8x32xf32>, vector<32x64xf32>, vector<8x64xf32> -> vector<8x64xf32>
    %179 = arith.addf %172, %178 : vector<8x64xf32>
    %180 = vector.extract_strided_slice %129 {offsets = [7, 0, 0], sizes = [1, 8, 32], strides = [1, 1, 1]} : vector<9x8x32xf32> to vector<1x8x32xf32>
    %181 = vector.shape_cast %180 : vector<1x8x32xf32> to vector<8x32xf32>
    %cst_65 = arith.constant dense<0.000000e+00> : vector<8x32xf32>
    %182 = tpu.matmul %181, %128, %cst_65 {dimension_numbers = #tpu.dot_dimension_numbers<[1], [0], [0], [1], [0, 0, 1, 1], [], []>} : vector<8x32xf32>, vector<32x32xf32>, vector<8x32xf32> -> vector<8x32xf32>
    %183 = vector.extract_strided_slice %130 {offsets = [7, 0, 0], sizes = [1, 32, 64], strides = [1, 1, 1]} : vector<9x32x64xf32> to vector<1x32x64xf32>
    %184 = vector.shape_cast %183 : vector<1x32x64xf32> to vector<32x64xf32>
    %cst_66 = arith.constant dense<0.000000e+00> : vector<8x64xf32>
    %185 = tpu.matmul %182, %184, %cst_66 {dimension_numbers = #tpu.dot_dimension_numbers<[1], [0], [0], [1], [0, 0, 1, 1], [], []>} : vector<8x32xf32>, vector<32x64xf32>, vector<8x64xf32> -> vector<8x64xf32>
    %186 = arith.addf %179, %185 : vector<8x64xf32>
    %187 = vector.extract_strided_slice %129 {offsets = [8, 0, 0], sizes = [1, 8, 32], strides = [1, 1, 1]} : vector<9x8x32xf32> to vector<1x8x32xf32>
    %188 = vector.shape_cast %187 : vector<1x8x32xf32> to vector<8x32xf32>
    %cst_67 = arith.constant dense<0.000000e+00> : vector<8x32xf32>
    %189 = tpu.matmul %188, %128, %cst_67 {dimension_numbers = #tpu.dot_dimension_numbers<[1], [0], [0], [1], [0, 0, 1, 1], [], []>} : vector<8x32xf32>, vector<32x32xf32>, vector<8x32xf32> -> vector<8x32xf32>
    %190 = vector.extract_strided_slice %130 {offsets = [8, 0, 0], sizes = [1, 32, 64], strides = [1, 1, 1]} : vector<9x32x64xf32> to vector<1x32x64xf32>
    %191 = vector.shape_cast %190 : vector<1x32x64xf32> to vector<32x64xf32>
    %cst_68 = arith.constant dense<0.000000e+00> : vector<8x64xf32>
    %192 = tpu.matmul %189, %191, %cst_68 {dimension_numbers = #tpu.dot_dimension_numbers<[1], [0], [0], [1], [0, 0, 1, 1], [], []>} : vector<8x32xf32>, vector<32x64xf32>, vector<8x64xf32> -> vector<8x64xf32>
    %193 = arith.addf %186, %192 : vector<8x64xf32>
    %194 = vector.extract_strided_slice %131 {offsets = [0, 0], sizes = [1, 64], strides = [1, 1]} : vector<3x64xf32> to vector<1x64xf32>
    %195 = vector.broadcast %194 : vector<1x64xf32> to vector<8x64xf32>
    %196 = arith.addf %193, %195 : vector<8x64xf32>
    %cst_69 = arith.constant 0.000000e+00 : f32
    %197 = vector.broadcast %cst_69 : f32 to vector<8x64xf32>
    %198 = arith.maximumf %196, %197 : vector<8x64xf32>
    %cst_70 = arith.constant dense<0.000000e+00> : vector<64xf32>
    %199 = vector.multi_reduction <add>, %198, %cst_70 [0] : vector<8x64xf32> to vector<64xf32>
    %200 = vector.shape_cast %199 : vector<64xf32> to vector<1x64xf32>
    %cst_71 = arith.constant 8.000000e+00 : f32
    %201 = vector.broadcast %cst_71 : f32 to vector<1x64xf32>
    %202 = arith.divf %200, %201 : vector<1x64xf32>
    %203 = vector.broadcast %202 : vector<1x64xf32> to vector<8x64xf32>
    %204 = arith.subf %198, %203 : vector<8x64xf32>
    %205 = vector.broadcast %202 : vector<1x64xf32> to vector<8x64xf32>
    %206 = arith.subf %198, %205 : vector<8x64xf32>
    %207 = arith.mulf %204, %206 : vector<8x64xf32>
    %cst_72 = arith.constant dense<0.000000e+00> : vector<64xf32>
    %208 = vector.multi_reduction <add>, %207, %cst_72 [0] : vector<8x64xf32> to vector<64xf32>
    %209 = vector.shape_cast %208 : vector<64xf32> to vector<1x64xf32>
    %cst_73 = arith.constant 8.000000e+00 : f32
    %210 = vector.broadcast %cst_73 : f32 to vector<1x64xf32>
    %211 = arith.divf %209, %210 : vector<1x64xf32>
    %212 = vector.broadcast %202 : vector<1x64xf32> to vector<8x64xf32>
    %213 = arith.subf %198, %212 : vector<8x64xf32>
    %214 = vector.extract_strided_slice %131 {offsets = [1, 0], sizes = [1, 64], strides = [1, 1]} : vector<3x64xf32> to vector<1x64xf32>
    %cst_74 = arith.constant 9.99999974E-6 : f32
    %215 = vector.broadcast %cst_74 : f32 to vector<1x64xf32>
    %216 = arith.addf %211, %215 : vector<1x64xf32>
    %217 = math.rsqrt %216 : vector<1x64xf32>
    %218 = arith.mulf %214, %217 : vector<1x64xf32>
    %219 = vector.broadcast %218 : vector<1x64xf32> to vector<8x64xf32>
    %220 = arith.mulf %213, %219 : vector<8x64xf32>
    %221 = vector.extract_strided_slice %131 {offsets = [2, 0], sizes = [1, 64], strides = [1, 1]} : vector<3x64xf32> to vector<1x64xf32>
    %222 = vector.broadcast %221 : vector<1x64xf32> to vector<8x64xf32>
    %223 = arith.addf %220, %222 : vector<8x64xf32>
    %c0_75 = arith.constant 0 : index
    %c0_76 = arith.constant 0 : index
    %224 = vector.load %arg11[%c0_75, %c0_76] : memref<65x12xf32, #tpu.memory_space<vmem>>, vector<65x12xf32>
    %c0_77 = arith.constant 0 : index
    %c0_78 = arith.constant 0 : index
    %225 = vector.load %arg10[%c0_77, %c0_78] : memref<2x8xf32, #tpu.memory_space<vmem>>, vector<2x8xf32>
    %cst_79 = arith.constant dense<0.000000e+00> : vector<2x64xf32>
    %226 = tpu.matmul %225, %223, %cst_79 {dimension_numbers = #tpu.dot_dimension_numbers<[1], [0], [0], [1], [0, 0, 1, 1], [], []>} : vector<2x8xf32>, vector<8x64xf32>, vector<2x64xf32> -> vector<2x64xf32>
    %227 = vector.extract_strided_slice %224 {offsets = [0, 0], sizes = [64, 12], strides = [1, 1]} : vector<65x12xf32> to vector<64x12xf32>
    %cst_80 = arith.constant dense<0.000000e+00> : vector<2x12xf32>
    %228 = tpu.matmul %226, %227, %cst_80 {dimension_numbers = #tpu.dot_dimension_numbers<[1], [0], [0], [1], [0, 0, 1, 1], [], []>} : vector<2x64xf32>, vector<64x12xf32>, vector<2x12xf32> -> vector<2x12xf32>
    %229 = vector.extract_strided_slice %224 {offsets = [64, 0], sizes = [1, 12], strides = [1, 1]} : vector<65x12xf32> to vector<1x12xf32>
    %230 = vector.broadcast %229 : vector<1x12xf32> to vector<2x12xf32>
    %231 = arith.addf %228, %230 : vector<2x12xf32>
    %c0_81 = arith.constant 0 : index
    %c0_82 = arith.constant 0 : index
    %232 = vector.load %arg12[%c0_81, %c0_82] : memref<2x12xf32, #tpu.memory_space<vmem>>, vector<2x12xf32>
    tpu.vector_store %arg12[%c0_81, %c0_82], %231 {strides = array<i32>} : memref<2x12xf32, #tpu.memory_space<vmem>>, vector<2x12xf32>,
    return
  }
  func.func @transform_0(%arg0: i32) -> (i32, i32) {
    %c0_i32 = arith.constant 0 : i32
    %c0_i32_0 = arith.constant 0 : i32
    %c0_i32_1 = arith.constant 0 : i32
    return %c0_i32, %c0_i32_0 : i32, i32
  }
  func.func @transform_1(%arg0: i32) -> (i32, i32, i32) {
    %c0_i32 = arith.constant 0 : i32
    %c0_i32_0 = arith.constant 0 : i32
    %c0_i32_1 = arith.constant 0 : i32
    %c0_i32_2 = arith.constant 0 : i32
    return %c0_i32, %c0_i32_0, %c0_i32_1 : i32, i32, i32
  }
  func.func @transform_2(%arg0: i32) -> (i32, i32, i32) {
    %c0_i32 = arith.constant 0 : i32
    %c0_i32_0 = arith.constant 0 : i32
    %c0_i32_1 = arith.constant 0 : i32
    %c0_i32_2 = arith.constant 0 : i32
    return %c0_i32, %c0_i32_0, %c0_i32_1 : i32, i32, i32
  }
  func.func @transform_3(%arg0: i32) -> (i32, i32) {
    %c0_i32 = arith.constant 0 : i32
    %c0_i32_0 = arith.constant 0 : i32
    %c0_i32_1 = arith.constant 0 : i32
    return %c0_i32, %c0_i32_0 : i32, i32
  }
  func.func @transform_4(%arg0: i32) -> (i32, i32, i32) {
    %c0_i32 = arith.constant 0 : i32
    %c0_i32_0 = arith.constant 0 : i32
    %c0_i32_1 = arith.constant 0 : i32
    %c0_i32_2 = arith.constant 0 : i32
    return %c0_i32, %c0_i32_0, %c0_i32_1 : i32, i32, i32
  }
  func.func @transform_5(%arg0: i32) -> (i32, i32, i32) {
    %c0_i32 = arith.constant 0 : i32
    %c0_i32_0 = arith.constant 0 : i32
    %c0_i32_1 = arith.constant 0 : i32
    %c0_i32_2 = arith.constant 0 : i32
    return %c0_i32, %c0_i32_0, %c0_i32_1 : i32, i32, i32
  }
  func.func @transform_6(%arg0: i32) -> (i32, i32) {
    %c0_i32 = arith.constant 0 : i32
    %c0_i32_0 = arith.constant 0 : i32
    %c0_i32_1 = arith.constant 0 : i32
    return %c0_i32, %c0_i32_0 : i32, i32
  }
  func.func @transform_7(%arg0: i32) -> (i32, i32) {
    %c0_i32 = arith.constant 0 : i32
    %c0_i32_0 = arith.constant 0 : i32
    %c0_i32_1 = arith.constant 0 : i32
    return %c0_i32, %c0_i32_0 : i32, i32
  }
  func.func @transform_8(%arg0: i32) -> (i32, i32) {
    %c0_i32 = arith.constant 0 : i32
    %c0_i32_0 = arith.constant 0 : i32
    %c0_i32_1 = arith.constant 0 : i32
    return %c0_i32, %c0_i32_0 : i32, i32
  }
  func.func @transform_9(%arg0: i32) -> (i32, i32) {
    %c0_i32 = arith.constant 0 : i32
    %c0_i32_0 = arith.constant 0 : i32
    %c0_i32_1 = arith.constant 0 : i32
    return %c0_i32, %c0_i32_0 : i32, i32
  }
  func.func @transform_10(%arg0: i32) -> (i32, i32) {
    %c0_i32 = arith.constant 0 : i32
    %c0_i32_0 = arith.constant 0 : i32
    %c0_i32_1 = arith.constant 0 : i32
    return %c0_i32, %c0_i32_0 : i32, i32
  }
  func.func @transform_11(%arg0: i32) -> (i32, i32) {
    %c0_i32 = arith.constant 0 : i32
    %c0_i32_0 = arith.constant 0 : i32
    %c0_i32_1 = arith.constant 0 : i32
    return %c0_i32, %c0_i32_0 : i32, i32
  }
}

</mosaic_0001>

<bundles_post_ra>
// kernel: cnn_feature_extractor.1
= control target key start
LH: loop header
LB: loop body
LE: loop exit
PB: predicated region body
PF: predicated region fallthrough
CT: control target
= control target key end

     0   :  { %vm110_vm0 = vcmask 1040384   ;;  %s2876_s0 = inlined_call_operand.vmem [shape: f32[128,25], index: 0, kind: input, shape index: {}]   ;;  %s2877_s1 = inlined_call_operand.vmem [shape: f32[9,32,128], index: 1, kind: input, shape index: {}]   ;;  %s2878_s2 = inlined_call_operand.vmem [shape: f32[9,8,32], index: 2, kind: input, shape index: {}]   ;;  %s2879_s3 = inlined_call_operand.vmem [shape: f32[25,16], index: 3, kind: input, shape index: {}]   ;;  %s2880_s4 = inlined_call_operand.vmem [shape: f32[9,16,32], index: 4, kind: input, shape index: {}]   ;;  %s2881_s5 = inlined_call_operand.vmem [shape: f32[9,32,64], index: 5, kind: input, shape index: {}]   ;;  %s2882_s6 = inlined_call_operand.vmem [shape: f32[3,16], index: 6, kind: input, shape index: {}]   ;;  %s2883_s7 = inlined_call_operand.vmem [shape: f32[3,32], index: 7, kind: input, shape index: {}]   ;;  %s2884_s8 = inlined_call_operand.vmem [shape: f32[3,64], index: 8, kind: input, shape index: {}]   ;;  %s2885_s9 = inlined_call_operand.vmem [shape: f32[2,8], index: 9, kind: input, shape index: {}]   ;;  %s2886_s10 = inlined_call_operand.vmem [shape: f32[65,12], index: 10, kind: input, shape index: {}]   ;;  %s2887_s11 = inlined_call_operand.hbm [shape: f32[2,12], index: 11, kind: output, shape index: {}]  }
   0x1   :  { %v58_v0 = vld [vmem:[%s2879_s3 + $0x18] sm:$0x1]  ;;  %v57_v1 = vld [vmem:[%s2879_s3 + $0x10] sm:$0xff]  ;;  %v56_v2 = vld [vmem:[%s2879_s3 + $0x8] sm:$0xff] }
   0x2   :  { %1733 = vmatpush.msk.msra.mxu0 %vm110_vm0, %v58_v0 }
   0x4   :  { %127 = vmatpush.msra.mxu0 %v57_v1 }
   0x5   :  { %16 = vsyncpa [#allocation3], 0  ;;  %v55_v3 = vld [vmem:[%s2879_s3] sm:$0xff]  ;;  %vm61_vm1 = vcmask 203776   ;;  %v40_v5 = vld [vmem:[%s2876_s0 + $0x8] sm:$0xff]  ;;  %vm195_vm2 = vcmask 130048  }
   0x6   :  { %128 = vmatpush.msra.mxu0 %v56_v2  ;;  %v39_v4 = vld [vmem:[%s2876_s0] sm:$0xff]  ;;  %v41_v6 = vld [vmem:[%s2876_s0 + $0x10] sm:$0xff]  ;;  %v42_v7 = vld [vmem:[%s2876_s0 + $0x18] sm:$0xff]  ;;  %vm1079_vm7 = vcmask 261120   ;;  %vm1615_vm12 = vcmask 523264   ;;  %s1854_s21 = smov [#allocation2]  }
   0x7   :  { %v43_v8 = vld [vmem:[%s2876_s0 + $0x20] sm:$0xff]  ;;  %v44_v9 = vld [vmem:[%s2876_s0 + $0x28] sm:$0xff]  ;;  %v45_v10 = vld [vmem:[%s2876_s0 + $0x30] sm:$0xff]  ;;  %s1722_s22 = sshll.u32 %s1854_s21, 4  ;;  %s1723_s22 = int_to_ptr.vmem [resolvable:$true] %s1722_s22 }
   0x8   :  { %129 = vmatpush.msra.mxu0 %v55_v3  ;;  %v46_v11 = vld [vmem:[%s2876_s0 + $0x38] sm:$0xff]  ;;  %v47_v12 = vld [vmem:[%s2876_s0 + $0x40] sm:$0xff]  ;;  %v48_v13 = vld [vmem:[%s2876_s0 + $0x48] sm:$0xff] }
   0x9   :  { %1734 = vmatmul.msk.f32.vlgmr.msra.gmra.mxu0 %vm61_vm1, %v39_v4  ;;  %v49_v14 = vld [vmem:[%s2876_s0 + $0x50] sm:$0xff]  ;;  %v50_v15 = vld [vmem:[%s2876_s0 + $0x58] sm:$0xff]  ;;  %v51_v16 = vld [vmem:[%s2876_s0 + $0x60] sm:$0xff] }
   0xa   :  { %v52_v17 = vld [vmem:[%s2876_s0 + $0x68] sm:$0xff]  ;;  %v53_v18 = vld [vmem:[%s2876_s0 + $0x70] sm:$0xff]  ;;  %v54_v19 = vld [vmem:[%s2876_s0 + $0x78] sm:$0xff] }
   0xb   :  { %v1994_v31 = vld [vmem:[%s2882_s6] sm:$0x7] }
   0xc   :  { %v1997_v32 = vperm.slane %v1994_v31, 0 }
  0x11   :  { %1735 = vmatmul.msk.f32.gmra.mxu0 %vm61_vm1, %v40_v5 }
  0x19   :  { %1736 = vmatmul.msk.f32.gmra.mxu0 %vm61_vm1, %v41_v6 }
  0x21   :  { %1737 = vmatmul.msk.f32.gmra.mxu0 %vm61_vm1, %v42_v7 }
  0x29   :  { %1738 = vmatmul.msk.f32.gmra.mxu0 %vm61_vm1, %v43_v8 }
  0x31   :  { %1739 = vmatmul.msk.f32.gmra.mxu0 %vm61_vm1, %v44_v9 }
  0x39   :  { %1740 = vmatmul.msk.f32.gmra.mxu0 %vm61_vm1, %v45_v10 }
  0x41   :  { %1741 = vmatmul.msk.f32.gmra.mxu0 %vm61_vm1, %v46_v11 }
  0x49   :  { %1742 = vmatmul.msk.f32.gmra.mxu0 %vm61_vm1, %v47_v12 }
  0x51   :  { %1743 = vmatmul.msk.f32.gmra.mxu0 %vm61_vm1, %v48_v13 }
  0x59   :  { %1744 = vmatmul.msk.f32.gmra.mxu0 %vm61_vm1, %v49_v14 }
  0x61   :  { %1745 = vmatmul.msk.f32.gmra.mxu0 %vm61_vm1, %v50_v15 }
  0x69   :  { %1746 = vmatmul.msk.f32.gmra.mxu0 %vm61_vm1, %v51_v16 }
  0x71   :  { %1747 = vmatmul.msk.f32.gmra.mxu0 %vm61_vm1, %v52_v17  ;;  %v1851_v17 = vmov 128.0  }
  0x72   :  { %1813 = vrcp.f32 %v1851_v17 }
  0x79   :  { %1748 = vmatmul.msk.f32.gmra.mxu0 %vm61_vm1, %v53_v18 }
  0x81   :  { %1749 = vmatmul.msk.f32.gmra.mxu0 %vm61_vm1, %v54_v19  ;;  %vm1667_vm1 = vcmask 64512  }
  0x86   :  { %v131_v20 = vpop.f32.mrf.mxu0 }
  0x87   :  { %v2003_v35 = vadd.f32 %v131_v20, %v1997_v32 }
  0x89   :  { %v179_v39 = vmax.f32 %v2003_v35, 0.0 }
  0x8b   :  { %v196_v46 = vsel %vm195_vm2, %v179_v39, 0.0 }
  0x8e   :  { %v134_v21 = vpop.f32.mrf.mxu0 }
  0x8f   :  { %v2000_v33 = vadd.f32 %v134_v21, %v1997_v32 }
  0x91   :  { %v180_v37 = vmax.f32 %v2000_v33, 0.0 }
  0x93   :  { %v197_v42 = vsel %vm195_vm2, %v180_v37, 0.0 }
  0x94   :  { %v198_v50 = vadd.f32 %v197_v42, %v196_v46 }
  0x96   :  { %v137_v22 = vpop.f32.mrf.mxu0 }
  0x97   :  { %v2006_v36 = vadd.f32 %v137_v22, %v1997_v32 }
  0x99   :  { %v181_v40 = vmax.f32 %v2006_v36, 0.0 }
  0x9b   :  { %v199_v47 = vsel %vm195_vm2, %v181_v40, 0.0 }
  0x9c   :  { %v200_v54 = vadd.f32 %v199_v47, %v198_v50 }
  0x9e   :  { %v140_v23 = vpop.f32.mrf.mxu0 }
  0x9f   :  { %v2010_v38 = vadd.f32 %v140_v23, %v1997_v32 }
  0xa1   :  { %v182_v43 = vmax.f32 %v2010_v38, 0.0 }
  0xa3   :  { %v201_v51 = vsel %vm195_vm2, %v182_v43, 0.0 }
  0xa4   :  { %v202_v58 = vadd.f32 %v201_v51, %v200_v54 }
  0xa6   :  { %v143_v24 = vpop.f32.mrf.mxu0 }
  0xa7   :  { %v2015_v41 = vadd.f32 %v143_v24, %v1997_v32 }
  0xa9   :  { %v183_v48 = vmax.f32 %v2015_v41, 0.0 }
  0xab   :  { %v203_v55 = vsel %vm195_vm2, %v183_v48, 0.0 }
  0xac   :  { %v204_v62 = vadd.f32 %v203_v55, %v202_v58 }
  0xae   :  { %v146_v25 = vpop.f32.mrf.mxu0 }
  0xaf   :  { %v2022_v44 = vadd.f32 %v146_v25, %v1997_v32 }
  0xb1   :  { %v184_v52 = vmax.f32 %v2022_v44, 0.0 }
  0xb3   :  { %v205_v59 = vsel %vm195_vm2, %v184_v52, 0.0 }
  0xb4   :  { %v206_v3 = vadd.f32 %v205_v59, %v204_v62 }
  0xb6   :  { %v149_v26 = vpop.f32.mrf.mxu0 }
  0xb7   :  { %v2032_v49 = vadd.f32 %v149_v26, %v1997_v32 }
  0xb9   :  { %v185_v56 = vmax.f32 %v2032_v49, 0.0 }
  0xbb   :  { %v207_v0 = vsel %vm195_vm2, %v185_v56, 0.0 }
  0xbc   :  { %v208_v7 = vadd.f32 %v207_v0, %v206_v3 }
  0xbe   :  { %v152_v27 = vpop.f32.mrf.mxu0 }
  0xbf   :  { %v2039_v53 = vadd.f32 %v152_v27, %v1997_v32  ;;  %v1814_v27 = vpop.eup %1813 }
  0xc0   :  { %v234_v46 = vmul.f32 128.0, %v1814_v27  ;;  %vm238_vm3 = vweird.f32 %v1814_v27 }
  0xc1   :  { %v186_v60 = vmax.f32 %v2039_v53, 0.0 }
  0xc2   :  { %v235_v55 = vsub.f32 1.0, %v234_v46 }
  0xc3   :  { %v209_v4 = vsel %vm195_vm2, %v186_v60, 0.0 }
  0xc4   :  { %v210_v11 = vadd.f32 %v209_v4, %v208_v7  ;;  %v236_v62 = vmul.f32 %v1814_v27, %v235_v55 }
  0xc6   :  { %v155_v28 = vpop.f32.mrf.mxu0  ;;  %v237_v3 = vadd.f32 %v1814_v27, %v236_v62 }
  0xc7   :  { %v2046_v57 = vadd.f32 %v155_v28, %v1997_v32 }
  0xc8   :  { %v2111_v7 = vsel %vm238_vm3, %v1814_v27, %v237_v3 }
  0xc9   :  { %v187_v1 = vmax.f32 %v2046_v57, 0.0 }
  0xcb   :  { %v211_v8 = vsel %vm195_vm2, %v187_v1, 0.0 }
  0xcc   :  { %v212_v15 = vadd.f32 %v211_v8, %v210_v11 }
  0xce   :  { %v158_v29 = vpop.f32.mrf.mxu0 }
  0xcf   :  { %v2053_v61 = vadd.f32 %v158_v29, %v1997_v32 }
  0xd1   :  { %v188_v5 = vmax.f32 %v2053_v61, 0.0 }
  0xd3   :  { %v213_v12 = vsel %vm195_vm2, %v188_v5, 0.0 }
  0xd4   :  { %v214_v21 = vadd.f32 %v213_v12, %v212_v15 }
  0xd6   :  { %v161_v30 = vpop.f32.mrf.mxu0 }
  0xd7   :  { %v2060_v2 = vadd.f32 %v161_v30, %v1997_v32 }
  0xd9   :  { %v189_v9 = vmax.f32 %v2060_v2, 0.0 }
  0xdb   :  { %v215_v18 = vsel %vm195_vm2, %v189_v9, 0.0 }
  0xdc   :  { %v216_v24 = vadd.f32 %v215_v18, %v214_v21 }
  0xde   :  { %v164_v34 = vpop.f32.mrf.mxu0 }
  0xdf   :  { %v2067_v6 = vadd.f32 %v164_v34, %v1997_v32 }
  0xe1   :  { %v190_v13 = vmax.f32 %v2067_v6, 0.0 }
  0xe3   :  { %v217_v22 = vsel %vm195_vm2, %v190_v13, 0.0 }
  0xe4   :  { %v218_v28 = vadd.f32 %v217_v22, %v216_v24 }
  0xe6   :  { %v167_v45 = vpop.f32.mrf.mxu0 }
  0xe7   :  { %v2074_v10 = vadd.f32 %v167_v45, %v1997_v32 }
  0xe9   :  { %v191_v19 = vmax.f32 %v2074_v10, 0.0 }
  0xeb   :  { %v219_v25 = vsel %vm195_vm2, %v191_v19, 0.0 }
  0xec   :  { %v220_v30 = vadd.f32 %v219_v25, %v218_v28 }
  0xee   :  { %v170_v63 = vpop.f32.mrf.mxu0 }
  0xef   :  { %v2081_v14 = vadd.f32 %v170_v63, %v1997_v32 }
  0xf1   :  { %v192_v23 = vmax.f32 %v2081_v14, 0.0 }
  0xf3   :  { %v221_v29 = vsel %vm195_vm2, %v192_v23, 0.0 }
  0xf4   :  { %v222_v47 = vadd.f32 %v221_v29, %v220_v30 }
  0xf6   :  { %v173_v16 = vpop.f32.mrf.mxu0 }
  0xf7   :  { %v2088_v20 = vadd.f32 %v173_v16, %v1997_v32 }
  0xf9   :  { %v193_v26 = vmax.f32 %v2088_v20, 0.0 }
  0xfb   :  { %v223_v42 = vsel %vm195_vm2, %v193_v26, 0.0 }
  0xfc   :  { %v224_v51 = vadd.f32 %v223_v42, %v222_v47 }
  0xfe   :  { %v176_v34 = vpop.f32.mrf.mxu0 }
  0xff   :  { %v2105_v45 = vadd.f32 %v176_v34, %v1997_v32 }
 0x101   :  { %v194_v50 = vmax.f32 %v2105_v45, 0.0 }
 0x103   :  { %v225_v54 = vsel %vm195_vm2, %v194_v50, 0.0 }
 0x104   :  { %v226_v58 = vadd.f32 %v225_v54, %v224_v51 }
 0x106   :  { %v227_v59 = vrot.slane %v226_v58, 4 }
 0x108   :  { %v228_v63 = vadd.f32 %v227_v59, %v226_v58 }
 0x10a   :  { %v229_v0 = vrot.slane %v228_v63, 2 }
 0x10c   :  { %v230_v4 = vadd.f32 %v229_v0, %v228_v63 }
 0x10e   :  { %v231_v32 = vrot.slane %v230_v4, 1 }
 0x110   :  { %v232_v8 = vadd.f32 %v231_v32, %v230_v4 }
 0x112   :  { %v240_v11 = vmul.f32 %v2111_v7, %v232_v8 }
 0x114   :  { %v2116_v12 = vsub.f32 %v179_v39, %v240_v11  ;;  %v2120_v15 = vsub.f32 %v180_v37, %v240_v11  ;;  %v2124_v16 = vsub.f32 %v181_v40, %v240_v11  ;;  %v2128_v17 = vsub.f32 %v182_v43, %v240_v11 }
 0x115   :  { %v2136_v39 = vsub.f32 %v183_v48, %v240_v11  ;;  %v2142_v36 = vsub.f32 %v184_v52, %v240_v11  ;;  %v2150_v41 = vsub.f32 %v185_v56, %v240_v11  ;;  %v2157_v52 = vsub.f32 %v186_v60, %v240_v11 }
 0x116   :  { %v257_v18 = vmul.f32 %v2116_v12, %v2116_v12  ;;  %v258_v35 = vmul.f32 %v2120_v15, %v2120_v15  ;;  %v259_v33 = vmul.f32 %v2124_v16, %v2124_v16  ;;  %v260_v37 = vmul.f32 %v2128_v17, %v2128_v17 }
 0x117   :  { %v261_v48 = vmul.f32 %v2136_v39, %v2136_v39  ;;  %v262_v22 = vmul.f32 %v2142_v36, %v2142_v36  ;;  %v2164_v49 = vsub.f32 %v187_v1, %v240_v11  ;;  %v263_v56 = vmul.f32 %v2150_v41, %v2150_v41 }
 0x118   :  { %v273_v38 = vsel %vm195_vm2, %v257_v18, 0.0  ;;  %v274_v40 = vsel %vm195_vm2, %v258_v35, 0.0  ;;  %v276_v21 = vsel %vm195_vm2, %v259_v33, 0.0  ;;  %v278_v24 = vsel %vm195_vm2, %v260_v37, 0.0 }
 0x119   :  { %v275_v43 = vadd.f32 %v274_v40, %v273_v38  ;;  %v280_v27 = vsel %vm195_vm2, %v261_v48, 0.0  ;;  %v2171_v53 = vsub.f32 %v188_v5, %v240_v11  ;;  %v264_v60 = vmul.f32 %v2157_v52, %v2157_v52 }
 0x11a   :  { %v282_v29 = vsel %vm195_vm2, %v262_v22, 0.0  ;;  %v251_v57 = vsub.f32 %v189_v9, %v240_v11  ;;  %v265_v1 = vmul.f32 %v2164_v49, %v2164_v49  ;;  %v284_v34 = vsel %vm195_vm2, %v263_v56, 0.0 }
 0x11b   :  { %v277_v44 = vadd.f32 %v276_v21, %v275_v43  ;;  %v252_v61 = vsub.f32 %v190_v13, %v240_v11  ;;  %v266_v5 = vmul.f32 %v2171_v53, %v2171_v53  ;;  %v286_v46 = vsel %vm195_vm2, %v264_v60, 0.0 }
 0x11c   :  { %v253_v51 = vsub.f32 %v191_v19, %v240_v11  ;;  %v267_v2 = vmul.f32 %v251_v57, %v251_v57  ;;  %v288_v9 = vsel %vm195_vm2, %v265_v1, 0.0  ;;  %v254_v55 = vsub.f32 %v192_v23, %v240_v11 }
 0x11d   :  { %v279_v25 = vadd.f32 %v278_v24, %v277_v44  ;;  %v268_v58 = vmul.f32 %v252_v61, %v252_v61  ;;  %v290_v6 = vsel %vm195_vm2, %v266_v5, 0.0  ;;  %v255_v59 = vsub.f32 %v193_v26, %v240_v11 }
 0x11e   :  { %v269_v62 = vmul.f32 %v253_v51, %v253_v51  ;;  %v292_v63 = vsel %vm195_vm2, %v267_v2, 0.0  ;;  %v256_v10 = vsub.f32 %v194_v50, %v240_v11  ;;  %v270_v19 = vmul.f32 %v254_v55, %v254_v55 }
 0x11f   :  { %v281_v28 = vadd.f32 %v280_v27, %v279_v25  ;;  %v294_v3 = vsel %vm195_vm2, %v268_v58, 0.0  ;;  %v271_v14 = vmul.f32 %v255_v59, %v255_v59 }
 0x120   :  { %v296_v23 = vsel %vm195_vm2, %v269_v62, 0.0  ;;  %v272_v8 = vmul.f32 %v256_v10, %v256_v10  ;;  %v298_v18 = vsel %vm195_vm2, %v270_v19, 0.0 }
 0x121   :  { %v283_v30 = vadd.f32 %v282_v29, %v281_v28  ;;  %v300_v26 = vsel %vm195_vm2, %v271_v14, 0.0  ;;  %v358_v14 = vld [vmem:[%s2877_s1 + $0x8] sm:$0xff] }
 0x122   :  { %v302_v33 = vsel %vm195_vm2, %v272_v8, 0.0  ;;  %v363_v8 = vld [vmem:[%s2877_s1 + $0x30] sm:$0xff] }
 0x123   :  { %v285_v42 = vadd.f32 %v284_v34, %v283_v30  ;;  %v340_v30 = vperm.slane %v1994_v31, 2 }
 0x125   :  { %v287_v47 = vadd.f32 %v286_v46, %v285_v42 }
 0x127   :  { %v289_v54 = vadd.f32 %v288_v9, %v287_v47 }
 0x129   :  { %v291_v13 = vadd.f32 %v290_v6, %v289_v54 }
 0x12b   :  { %v293_v0 = vadd.f32 %v292_v63, %v291_v13 }
 0x12d   :  { %v295_v4 = vadd.f32 %v294_v3, %v293_v0  ;;  %v398_v3 = vld [vmem:[%s2880_s4 + $0x28] sm:$0xff] }
 0x12f   :  { %v297_v32 = vadd.f32 %v296_v23, %v295_v4  ;;  %v397_v4 = vld [vmem:[%s2880_s4 + $0x20] sm:$0xff]  ;;  %v362_v23 = vld [vmem:[%s2877_s1 + $0x28] sm:$0xff] }
 0x131   :  { %v299_v20 = vadd.f32 %v298_v18, %v297_v32  ;;  %v359_v32 = vld [vmem:[%s2877_s1 + $0x10] sm:$0xff]  ;;  %v360_v18 = vld [vmem:[%s2877_s1 + $0x18] sm:$0xff] }
 0x133   :  { %v301_v35 = vadd.f32 %v300_v26, %v299_v20  ;;  %v364_v20 = vld [vmem:[%s2877_s1 + $0x38] sm:$0xff] }
 0x134   :  { %v400_v26 = vld [vmem:[%s2880_s4 + $0x38] sm:$0xff] }
 0x135   :  { %v303_v37 = vadd.f32 %v302_v33, %v301_v35  ;;  %v365_v35 = vld [vmem:[%s2877_s1 + $0x40] sm:$0xff]  ;;  %v399_v33 = vld [vmem:[%s2880_s4 + $0x30] sm:$0xff] }
 0x137   :  { %v304_v45 = vrot.slane %v303_v37, 4 }
 0x139   :  { %v305_v50 = vadd.f32 %v304_v45, %v303_v37  ;;  %v366_v37 = vld [vmem:[%s2877_s1 + $0x48] sm:$0xff]  ;;  %v367_v45 = vld [vmem:[%s2877_s1 + $0x50] sm:$0xff] }
 0x13b   :  { %v306_v11 = vrot.slane %v305_v50, 2 }
 0x13d   :  { %v307_v38 = vadd.f32 %v306_v11, %v305_v50  ;;  %v368_v50 = vld [vmem:[%s2877_s1 + $0x58] sm:$0xff] }
 0x13e   :  { %v396_v11 = vld [vmem:[%s2880_s4 + $0x18] sm:$0xff] }
 0x13f   :  { %v308_v40 = vrot.slane %v307_v38, 1  ;;  %496 = vmatpush.msra.mxu3 %v396_v11  ;;  %v386_v11 = vld [vmem:[%s2877_s1 + $0xe8] sm:$0xff] }
 0x141   :  { %v309_v43 = vadd.f32 %v308_v40, %v307_v38  ;;  %v395_v38 = vld [vmem:[%s2880_s4 + $0x10] sm:$0xff]  ;;  %v394_v40 = vld [vmem:[%s2880_s4 + $0x8] sm:$0xff] }
 0x142   :  { %497 = vmatpush.msra.mxu3 %v395_v38  ;;  %v391_v38 = vld [vmem:[%s2877_s1 + $0x110] sm:$0xff] }
 0x143   :  { %v310_v48 = vmul.f32 %v309_v43, %v2111_v7  ;;  %v393_v43 = vld [vmem:[%s2880_s4] sm:$0xff] }
 0x144   :  { %537 = vmatpush.msrb.mxu3 %v394_v40  ;;  %v387_v40 = vld [vmem:[%s2877_s1 + $0xf0] sm:$0xff] }
 0x145   :  { %v311_v21 = vadd.f32 1e-05, %v310_v48 }
 0x146   :  { %538 = vmatpush.msrb.mxu3 %v393_v43  ;;  %v392_v43 = vld [vmem:[%s2877_s1 + $0x118] sm:$0xff] }
 0x147   :  { %1815 = vrsqrt.f32 %v311_v21  ;;  %vm318_vm5 = vweird.f32 %v311_v21 }
 0x14d   :  { %v1816_v44 = vpop.eup %1815 }
 0x14e   :  { %v313_v22 = vmul.f32 %v1816_v44, %v311_v21  ;;  %vm319_vm4 = vweird.f32 %v1816_v44 }
 0x14f   :  { %vm320_vm6 = vmor %vm318_vm5, %vm319_vm4 }
 0x150   :  { %v314_v24 = vmul.f32 %v1816_v44, %v313_v22 }
 0x152   :  { %v315_v25 = vmul.f32 0.5, %v314_v24 }
 0x154   :  { %v316_v56 = vsub.f32 1.5, %v315_v25 }
 0x156   :  { %v317_v27 = vmul.f32 %v1816_v44, %v316_v56 }
 0x158   :  { %v321_v28 = vsel %vm320_vm6, %v1816_v44, %v317_v27 }
 0x159   :  { %v322_v60 = vmul.f32 %v321_v28, %v1994_v31 }
 0x15b   :  { %v323_v29 = vperm.slane %v322_v60, 1  ;;  %v402_v60 = vld [vmem:[%s2880_s4 + $0x48] sm:$0xff] }
 0x15d   :  { %v334_v1 = vmul.f32 %v323_v29, %v251_v57  ;;  %v339_v34 = vmul.f32 %v323_v29, %v256_v10  ;;  %v338_v7 = vmul.f32 %v323_v29, %v255_v59  ;;  %v337_v42 = vmul.f32 %v323_v29, %v254_v55 }
 0x15e   :  { %v336_v46 = vmul.f32 %v323_v29, %v253_v51  ;;  %v335_v2 = vmul.f32 %v323_v29, %v252_v61  ;;  %v333_v57 = vmul.f32 %v323_v29, %v2171_v53  ;;  %v332_v61 = vmul.f32 %v323_v29, %v2164_v49 }
 0x15f   :  { %v2205_v5 = vadd.f32 %v340_v30, %v339_v34  ;;  %v2207_v47 = vadd.f32 %v340_v30, %v338_v7  ;;  %v2211_v9 = vadd.f32 %v340_v30, %v337_v42  ;;  %v2225_v54 = vadd.f32 %v340_v30, %v334_v1  ;;  %v373_v7 = vld [vmem:[%s2877_s1 + $0x80] sm:$0xff] }
 0x160   :  { %v2215_v31 = vadd.f32 %v340_v30, %v336_v46  ;;  %v2220_v51 = vadd.f32 %v340_v30, %v335_v2  ;;  %v331_v55 = vmul.f32 %v323_v29, %v2157_v52  ;;  %v2230_v58 = vadd.f32 %v340_v30, %v333_v57  ;;  %v369_v42 = vld [vmem:[%s2877_s1 + $0x60] sm:$0xff]  ;;  %v374_v46 = vld [vmem:[%s2877_s1 + $0x88] sm:$0xff]  ;;  %v375_v57 = vld [vmem:[%s2877_s1 + $0x90] sm:$0xff] }
 0x161   :  { %412 = vmatpush.msra.mxu1 %v2205_v5  ;;  %441 = vmatpush.msra.mxu2 %v2205_v5  ;;  %v330_v53 = vmul.f32 %v323_v29, %v2150_v41  ;;  %v2235_v6 = vadd.f32 %v340_v30, %v332_v61  ;;  %v329_v49 = vmul.f32 %v323_v29, %v2142_v36  ;;  %v370_v2 = vld [vmem:[%s2877_s1 + $0x68] sm:$0xff]  ;;  %v371_v61 = vld [vmem:[%s2877_s1 + $0x70] sm:$0xff] }
 0x162   :  { %v2240_v13 = vadd.f32 %v340_v30, %v331_v55  ;;  %v328_v52 = vmul.f32 %v323_v29, %v2136_v39  ;;  %v327_v41 = vmul.f32 %v323_v29, %v2128_v17  ;;  %v326_v36 = vmul.f32 %v323_v29, %v2124_v16  ;;  %v376_v55 = vld [vmem:[%s2877_s1 + $0x98] sm:$0xff] }
 0x163   :  { %413 = vmatpush.msra.mxu1 %v2207_v47  ;;  %442 = vmatpush.msra.mxu2 %v2207_v47  ;;  %v2245_v59 = vadd.f32 %v340_v30, %v330_v53  ;;  %v2250_v62 = vadd.f32 %v340_v30, %v329_v49  ;;  %v325_v17 = vmul.f32 %v323_v29, %v2120_v15  ;;  %v357_v15 = vld [vmem:[%s2877_s1] sm:$0xff]  ;;  %v372_v53 = vld [vmem:[%s2877_s1 + $0x78] sm:$0xff] }
 0x164   :  { %v2255_v63 = vadd.f32 %v340_v30, %v328_v52  ;;  %v2261_v39 = vadd.f32 %v340_v30, %v327_v41  ;;  %v2266_v0 = vadd.f32 %v340_v30, %v326_v36  ;;  %v324_v16 = vmul.f32 %v323_v29, %v2116_v12  ;;  %v361_v12 = vld [vmem:[%s2877_s1 + $0x20] sm:$0xff] }
 0x165   :  { %414 = vmatpush.msra.mxu1 %v2211_v9  ;;  %443 = vmatpush.msra.mxu2 %v2211_v9  ;;  %v2271_v10 = vadd.f32 %v340_v30, %v325_v17  ;;  %v401_v29 = vld [vmem:[%s2880_s4 + $0x40] sm:$0xff] }
 0x166   :  { %v2275_v19 = vadd.f32 %v340_v30, %v324_v16 }
 0x167   :  { %415 = vmatpush.msra.mxu1 %v2215_v31  ;;  %444 = vmatpush.msra.mxu2 %v2215_v31 }
 0x169   :  { %416 = vmatpush.msra.mxu1 %v2220_v51  ;;  %445 = vmatpush.msra.mxu2 %v2220_v51 }
 0x16b   :  { %417 = vmatpush.msra.mxu1 %v2225_v54  ;;  %446 = vmatpush.msra.mxu2 %v2225_v54 }
 0x16d   :  { %418 = vmatpush.msra.mxu1 %v2230_v58  ;;  %447 = vmatpush.msra.mxu2 %v2230_v58 }
 0x16f   :  { %419 = vmatpush.msra.mxu1 %v2235_v6  ;;  %448 = vmatpush.msra.mxu2 %v2235_v6 }
 0x171   :  { %420 = vmatpush.msra.mxu1 %v2240_v13  ;;  %449 = vmatpush.msra.mxu2 %v2240_v13 }
 0x173   :  { %421 = vmatpush.msra.mxu1 %v2245_v59  ;;  %450 = vmatpush.msra.mxu2 %v2245_v59 }
 0x175   :  { %422 = vmatpush.msra.mxu1 %v2250_v62  ;;  %451 = vmatpush.msra.mxu2 %v2250_v62 }
 0x177   :  { %423 = vmatpush.msra.mxu1 %v2255_v63  ;;  %452 = vmatpush.msra.mxu2 %v2255_v63 }
 0x179   :  { %424 = vmatpush.msra.mxu1 %v2261_v39  ;;  %453 = vmatpush.msra.mxu2 %v2261_v39 }
 0x17b   :  { %425 = vmatpush.msra.mxu1 %v2266_v0  ;;  %454 = vmatpush.msra.mxu2 %v2266_v0 }
 0x17d   :  { %426 = vmatpush.msra.mxu1 %v2271_v10  ;;  %455 = vmatpush.msra.mxu2 %v2271_v10 }
 0x17f   :  { %427 = vmatpush.msra.mxu1 %v2275_v19  ;;  %456 = vmatpush.msra.mxu2 %v2275_v19 }
 0x180   :  { %428 = vmatmul.f32.vlgmr.msra.gmra.mxu1 %v357_v15  ;;  %457 = vmatmul.f32.vlgmr.msra.gmra.mxu2 %v361_v12 }
 0x181   :  { %552 = vmatpush.msrb.mxu1 %v2205_v5  ;;  %607 = vmatpush.msrb.mxu2 %v398_v3 }
 0x183   :  { %553 = vmatpush.msrb.mxu1 %v2207_v47  ;;  %608 = vmatpush.msrb.mxu2 %v397_v4 }
 0x185   :  { %700 = vmatpush.msra.mxu2 %v2205_v5  ;;  %554 = vmatpush.msrb.mxu1 %v2211_v9 }
 0x187   :  { %701 = vmatpush.msra.mxu2 %v2207_v47  ;;  %555 = vmatpush.msrb.mxu1 %v2215_v31 }
 0x188   :  { %431 = vmatmul.f32.gmra.mxu1 %v358_v14  ;;  %460 = vmatmul.f32.gmra.mxu2 %v362_v23 }
 0x189   :  { %702 = vmatpush.msra.mxu2 %v2211_v9  ;;  %556 = vmatpush.msrb.mxu1 %v2220_v51 }
 0x18b   :  { %703 = vmatpush.msra.mxu2 %v2215_v31  ;;  %557 = vmatpush.msrb.mxu1 %v2225_v54 }
 0x18d   :  { %704 = vmatpush.msra.mxu2 %v2220_v51  ;;  %558 = vmatpush.msrb.mxu1 %v2230_v58 }
 0x18f   :  { %705 = vmatpush.msra.mxu2 %v2225_v54  ;;  %559 = vmatpush.msrb.mxu1 %v2235_v6 }
 0x190   :  { %434 = vmatmul.f32.gmra.mxu1 %v359_v32  ;;  %463 = vmatmul.f32.gmra.mxu2 %v363_v8 }
 0x191   :  { %706 = vmatpush.msra.mxu2 %v2230_v58  ;;  %560 = vmatpush.msrb.mxu1 %v2240_v13 }
 0x193   :  { %707 = vmatpush.msra.mxu2 %v2235_v6  ;;  %561 = vmatpush.msrb.mxu1 %v2245_v59 }
 0x195   :  { %708 = vmatpush.msra.mxu2 %v2240_v13  ;;  %562 = vmatpush.msrb.mxu1 %v2250_v62 }
 0x197   :  { %709 = vmatpush.msra.mxu2 %v2245_v59  ;;  %563 = vmatpush.msrb.mxu1 %v2255_v63 }
 0x198   :  { %437 = vmatmul.f32.gmra.mxu1 %v360_v18  ;;  %466 = vmatmul.f32.gmra.mxu2 %v364_v20 }
 0x199   :  { %710 = vmatpush.msra.mxu2 %v2250_v62  ;;  %564 = vmatpush.msrb.mxu1 %v2261_v39 }
 0x19b   :  { %711 = vmatpush.msra.mxu2 %v2255_v63  ;;  %565 = vmatpush.msrb.mxu1 %v2266_v0 }
 0x19d   :  { %712 = vmatpush.msra.mxu2 %v2261_v39  ;;  %566 = vmatpush.msrb.mxu1 %v2271_v10 }
 0x19f   :  { %713 = vmatpush.msra.mxu2 %v2266_v0  ;;  %567 = vmatpush.msrb.mxu1 %v2275_v19 }
 0x1a0   :  { %568 = vmatmul.f32.vlgmr.msrb.gmra.mxu1 %v365_v35 }
 0x1a1   :  { %681 = vmatpush.msra.mxu1 %v400_v26  ;;  %714 = vmatpush.msra.mxu2 %v2271_v10 }
 0x1a3   :  { %682 = vmatpush.msra.mxu1 %v399_v33  ;;  %715 = vmatpush.msra.mxu2 %v2275_v19 }
 0x1a5   :  { %774 = vmatpush.msrb.mxu1 %v2205_v5 }
 0x1a7   :  { %775 = vmatpush.msrb.mxu1 %v2207_v47 }
 0x1a8   :  { %571 = vmatmul.f32.gmra.mxu1 %v366_v37 }
 0x1a9   :  { %776 = vmatpush.msrb.mxu1 %v2211_v9 }
 0x1ab   :  { %777 = vmatpush.msrb.mxu1 %v2215_v31 }
 0x1ad   :  { %778 = vmatpush.msrb.mxu1 %v2220_v51 }
 0x1af   :  { %779 = vmatpush.msrb.mxu1 %v2225_v54 }
 0x1b0   :  { %574 = vmatmul.f32.gmra.mxu1 %v367_v45 }
 0x1b1   :  { %780 = vmatpush.msrb.mxu1 %v2230_v58 }
 0x1b3   :  { %781 = vmatpush.msrb.mxu1 %v2235_v6 }
 0x1b5   :  { %782 = vmatpush.msrb.mxu1 %v2240_v13 }
 0x1b7   :  { %783 = vmatpush.msrb.mxu1 %v2245_v59 }
 0x1b8   :  { %577 = vmatmul.f32.gmra.mxu1 %v368_v50 }
 0x1b9   :  { %784 = vmatpush.msrb.mxu1 %v2250_v62 }
 0x1bb   :  { %785 = vmatpush.msrb.mxu1 %v2255_v63 }
 0x1bd   :  { %786 = vmatpush.msrb.mxu1 %v2261_v39 }
 0x1bf   :  { %787 = vmatpush.msrb.mxu1 %v2266_v0 }
 0x1c1   :  { %788 = vmatpush.msrb.mxu1 %v2271_v10 }
 0x1c3   :  { %789 = vmatpush.msrb.mxu1 %v2275_v19 }
 0x1fd   :  { %v429_v48 = vpop.f32.mrf.mxu1 }
 0x203   :  { %v458_v21 = vpop.f32.mrf.mxu2 }
 0x204   :  { %1750 = vmatmul.msk.f32.vlgmr.msra.gmra.mxu3 %vm195_vm2, %v458_v21  ;;  %v405_v21 = vld [vmem:[%s2880_s4 + $0x60] sm:$0xff] }
 0x205   :  { %626 = vmatpush.msra.mxu3 %v2205_v5  ;;  %v432_v44 = vpop.f32.mrf.mxu1 }
 0x207   :  { %627 = vmatpush.msra.mxu3 %v2207_v47 }
 0x209   :  { %628 = vmatpush.msra.mxu3 %v2211_v9 }
 0x20b   :  { %629 = vmatpush.msra.mxu3 %v2215_v31  ;;  %v461_v22 = vpop.f32.mrf.mxu2 }
 0x20c   :  { %1751 = vmatmul.msk.f32.gmra.mxu3 %vm195_vm2, %v461_v22  ;;  %v404_v22 = vld [vmem:[%s2880_s4 + $0x58] sm:$0xff] }
 0x20d   :  { %v435_v24 = vpop.f32.mrf.mxu1  ;;  %630 = vmatpush.msra.mxu3 %v2220_v51 }
 0x20f   :  { %631 = vmatpush.msra.mxu3 %v2225_v54 }
 0x211   :  { %632 = vmatpush.msra.mxu3 %v2230_v58 }
 0x213   :  { %633 = vmatpush.msra.mxu3 %v2235_v6  ;;  %v464_v25 = vpop.f32.mrf.mxu2 }
 0x214   :  { %1752 = vmatmul.msk.f32.gmra.mxu3 %vm195_vm2, %v464_v25 }
 0x215   :  { %v438_v56 = vpop.f32.mrf.mxu1  ;;  %634 = vmatpush.msra.mxu3 %v2240_v13 }
 0x217   :  { %635 = vmatpush.msra.mxu3 %v2245_v59 }
 0x219   :  { %636 = vmatpush.msra.mxu3 %v2250_v62 }
 0x21b   :  { %637 = vmatpush.msra.mxu3 %v2255_v63  ;;  %v467_v27 = vpop.f32.mrf.mxu2 }
 0x21c   :  { %1753 = vmatmul.msk.f32.gmra.mxu3 %vm195_vm2, %v467_v27  ;;  %v403_v27 = vld [vmem:[%s2880_s4 + $0x50] sm:$0xff] }
 0x21d   :  { %638 = vmatpush.msra.mxu3 %v2261_v39  ;;  %v569_v28 = vpop.f32.mrf.mxu1 }
 0x21e   :  { %1758 = vmatmul.msk.f32.vlgmr.msrb.gmra.mxu2 %vm195_vm2, %v569_v28 }
 0x21f   :  { %639 = vmatpush.msra.mxu3 %v2266_v0  ;;  %829 = vmatpush.msrb.mxu2 %v404_v22 }
 0x221   :  { %640 = vmatpush.msra.mxu3 %v2271_v10  ;;  %830 = vmatpush.msrb.mxu2 %v403_v27 }
 0x223   :  { %641 = vmatpush.msra.mxu3 %v2275_v19 }
 0x224   :  { %1754 = vmatmul.msk.f32.vlgmr.msrb.gmra.mxu3 %vm195_vm2, %v429_v48  ;;  %v388_v48 = vld [vmem:[%s2877_s1 + $0xf8] sm:$0xff] }
 0x225   :  { %v572_v30 = vpop.f32.mrf.mxu1  ;;  %755 = vmatpush.msrb.mxu3 %v402_v60 }
 0x226   :  { %1759 = vmatmul.msk.f32.gmra.mxu2 %vm195_vm2, %v572_v30 }
 0x227   :  { %756 = vmatpush.msrb.mxu3 %v401_v29 }
 0x22c   :  { %1755 = vmatmul.msk.f32.gmra.mxu3 %vm195_vm2, %v432_v44 }
 0x22d   :  { %v575_v1 = vpop.f32.mrf.mxu1 }
 0x22e   :  { %1760 = vmatmul.msk.f32.gmra.mxu2 %vm195_vm2, %v575_v1 }
 0x234   :  { %1756 = vmatmul.msk.f32.gmra.mxu3 %vm195_vm2, %v435_v24 }
 0x235   :  { %v578_v34 = vpop.f32.mrf.mxu1 }
 0x236   :  { %1761 = vmatmul.msk.f32.gmra.mxu2 %vm195_vm2, %v578_v34 }
 0x23c   :  { %1757 = vmatmul.msk.f32.gmra.mxu3 %vm195_vm2, %v438_v56 }
 0x23e   :  { %716 = vmatmul.f32.vlgmr.msra.gmra.mxu2 %v373_v7 }
 0x244   :  { %642 = vmatmul.f32.vlgmr.msra.gmra.mxu3 %v369_v42 }
 0x245   :  { %848 = vmatpush.msra.mxu3 %v2205_v5 }
 0x246   :  { %719 = vmatmul.f32.gmra.mxu2 %v374_v46 }
 0x247   :  { %849 = vmatpush.msra.mxu3 %v2207_v47 }
 0x249   :  { %850 = vmatpush.msra.mxu3 %v2211_v9 }
 0x24b   :  { %851 = vmatpush.msra.mxu3 %v2215_v31 }
 0x24c   :  { %645 = vmatmul.f32.gmra.mxu3 %v370_v2 }
 0x24d   :  { %852 = vmatpush.msra.mxu3 %v2220_v51 }
 0x24e   :  { %722 = vmatmul.f32.gmra.mxu2 %v375_v57 }
 0x24f   :  { %853 = vmatpush.msra.mxu3 %v2225_v54 }
 0x251   :  { %854 = vmatpush.msra.mxu3 %v2230_v58 }
 0x253   :  { %855 = vmatpush.msra.mxu3 %v2235_v6 }
 0x254   :  { %648 = vmatmul.f32.gmra.mxu3 %v371_v61 }
 0x255   :  { %856 = vmatpush.msra.mxu3 %v2240_v13 }
 0x256   :  { %725 = vmatmul.f32.gmra.mxu2 %v376_v55 }
 0x257   :  { %857 = vmatpush.msra.mxu3 %v2245_v59 }
 0x259   :  { %858 = vmatpush.msra.mxu3 %v2250_v62 }
 0x25b   :  { %859 = vmatpush.msra.mxu3 %v2255_v63 }
 0x25c   :  { %651 = vmatmul.f32.gmra.mxu3 %v372_v53  ;;  %v408_v53 = vld [vmem:[%s2880_s4 + $0x78] sm:$0xff] }
 0x25d   :  { %860 = vmatpush.msra.mxu3 %v2261_v39  ;;  %977 = vmatpush.msra.mxu2 %v408_v53 }
 0x25f   :  { %861 = vmatpush.msra.mxu3 %v2266_v0 }
 0x261   :  { %862 = vmatpush.msra.mxu3 %v2271_v10 }
 0x263   :  { %863 = vmatpush.msra.mxu3 %v2275_v19 }
 0x287   :  { %v2461_v49 = vpop.f32.mrf.mxu3 }
 0x28f   :  { %v502_v52 = vpop.f32.mrf.mxu3 }
 0x297   :  { %v505_v41 = vpop.f32.mrf.mxu3 }
 0x29f   :  { %v508_v36 = vpop.f32.mrf.mxu3 }
 0x2a1   :  { %v2463_v17 = vpop.f32.mrf.mxu2 }
 0x2a7   :  { %v2465_v16 = vpop.f32.mrf.mxu3 }
 0x2a8   :  { %v541_v44 = vadd.f32 %v2465_v16, %v2461_v49 }
 0x2a9   :  { %v613_v15 = vpop.f32.mrf.mxu2 }
 0x2aa   :  { %v622_v24 = vadd.f32 %v2463_v17, %v541_v44  ;;  %v410_v17 = vld [vmem:[%s2880_s4 + $0x88] sm:$0xff] }
 0x2af   :  { %v543_v12 = vpop.f32.mrf.mxu3 }
 0x2b0   :  { %v544_v3 = vadd.f32 %v543_v12, %v502_v52  ;;  %v409_v12 = vld [vmem:[%s2880_s4 + $0x80] sm:$0xff] }
 0x2b1   :  { %v616_v4 = vpop.f32.mrf.mxu2 }
 0x2b2   :  { %v2467_v14 = vadd.f32 %v613_v15, %v544_v3 }
 0x2b7   :  { %v546_v23 = vpop.f32.mrf.mxu3 }
 0x2b8   :  { %v547_v32 = vadd.f32 %v546_v23, %v505_v41 }
 0x2b9   :  { %v619_v8 = vpop.f32.mrf.mxu2 }
 0x2ba   :  { %v2469_v18 = vadd.f32 %v616_v4, %v547_v32 }
 0x2bf   :  { %v549_v20 = vpop.f32.mrf.mxu3 }
 0x2c0   :  { %v550_v26 = vadd.f32 %v549_v20, %v508_v36  ;;  %v407_v36 = vld [vmem:[%s2880_s4 + $0x70] sm:$0xff] }
 0x2c1   :  { %v717_v35 = vpop.f32.mrf.mxu2  ;;  %978 = vmatpush.msra.mxu2 %v407_v36 }
 0x2c2   :  { %1766 = vmatmul.msk.f32.vlgmr.msrb.gmra.mxu3 %vm195_vm2, %v717_v35  ;;  %v2472_v33 = vadd.f32 %v619_v8, %v550_v26 }
 0x2c3   :  { %996 = vmatpush.msrb.mxu3 %v2205_v5 }
 0x2c5   :  { %997 = vmatpush.msrb.mxu3 %v2207_v47 }
 0x2c7   :  { %998 = vmatpush.msrb.mxu3 %v2211_v9  ;;  %v643_v37 = vpop.f32.mrf.mxu3 }
 0x2c8   :  { %1762 = vmatmul.msk.f32.vlgmr.msra.gmra.mxu1 %vm195_vm2, %v643_v37 }
 0x2c9   :  { %922 = vmatpush.msra.mxu1 %v2205_v5  ;;  %999 = vmatpush.msrb.mxu3 %v2215_v31  ;;  %v720_v45 = vpop.f32.mrf.mxu2 }
 0x2ca   :  { %1767 = vmatmul.msk.f32.gmra.mxu3 %vm195_vm2, %v720_v45 }
 0x2cb   :  { %923 = vmatpush.msra.mxu1 %v2207_v47  ;;  %1000 = vmatpush.msrb.mxu3 %v2220_v51 }
 0x2cd   :  { %924 = vmatpush.msra.mxu1 %v2211_v9  ;;  %1001 = vmatpush.msrb.mxu3 %v2225_v54 }
 0x2cf   :  { %925 = vmatpush.msra.mxu1 %v2215_v31  ;;  %1002 = vmatpush.msrb.mxu3 %v2230_v58  ;;  %v646_v50 = vpop.f32.mrf.mxu3 }
 0x2d0   :  { %1763 = vmatmul.msk.f32.gmra.mxu1 %vm195_vm2, %v646_v50 }
 0x2d1   :  { %926 = vmatpush.msra.mxu1 %v2220_v51  ;;  %1003 = vmatpush.msrb.mxu3 %v2235_v6  ;;  %v723_v5 = vpop.f32.mrf.mxu2  ;;  %v381_v51 = vld [vmem:[%s2877_s1 + $0xc0] sm:$0xff] }
 0x2d2   :  { %1768 = vmatmul.msk.f32.gmra.mxu3 %vm195_vm2, %v723_v5 }
 0x2d3   :  { %927 = vmatpush.msra.mxu1 %v2225_v54  ;;  %1004 = vmatpush.msrb.mxu3 %v2240_v13  ;;  %v377_v54 = vld [vmem:[%s2877_s1 + $0xa0] sm:$0xff] }
 0x2d5   :  { %928 = vmatpush.msra.mxu1 %v2230_v58  ;;  %1005 = vmatpush.msrb.mxu3 %v2245_v59  ;;  %v382_v58 = vld [vmem:[%s2877_s1 + $0xc8] sm:$0xff] }
 0x2d7   :  { %929 = vmatpush.msra.mxu1 %v2235_v6  ;;  %1006 = vmatpush.msrb.mxu3 %v2250_v62  ;;  %v649_v47 = vpop.f32.mrf.mxu3  ;;  %v406_v6 = vld [vmem:[%s2880_s4 + $0x68] sm:$0xff] }
 0x2d8   :  { %1764 = vmatmul.msk.f32.gmra.mxu1 %vm195_vm2, %v649_v47  ;;  %903 = vmatpush.msrb.mxu0 %v406_v6 }
 0x2d9   :  { %930 = vmatpush.msra.mxu1 %v2240_v13  ;;  %1007 = vmatpush.msrb.mxu3 %v2255_v63  ;;  %v726_v9 = vpop.f32.mrf.mxu2  ;;  %v378_v13 = vld [vmem:[%s2877_s1 + $0xa8] sm:$0xff] }
 0x2da   :  { %1769 = vmatmul.msk.f32.gmra.mxu3 %vm195_vm2, %v726_v9  ;;  %904 = vmatpush.msrb.mxu0 %v405_v21 }
 0x2db   :  { %931 = vmatpush.msra.mxu1 %v2245_v59  ;;  %1008 = vmatpush.msrb.mxu3 %v2261_v39  ;;  %v383_v59 = vld [vmem:[%s2877_s1 + $0xd0] sm:$0xff] }
 0x2dc   :  { %1051 = vmatpush.msra.mxu0 %v410_v17 }
 0x2dd   :  { %932 = vmatpush.msra.mxu1 %v2250_v62  ;;  %1009 = vmatpush.msrb.mxu3 %v2266_v0  ;;  %v379_v62 = vld [vmem:[%s2877_s1 + $0xb0] sm:$0xff] }
 0x2de   :  { %1052 = vmatpush.msra.mxu0 %v409_v12 }
 0x2df   :  { %933 = vmatpush.msra.mxu1 %v2255_v63  ;;  %1010 = vmatpush.msrb.mxu3 %v2271_v10  ;;  %v652_v31 = vpop.f32.mrf.mxu3  ;;  %v384_v63 = vld [vmem:[%s2877_s1 + $0xd8] sm:$0xff] }
 0x2e0   :  { %1765 = vmatmul.msk.f32.gmra.mxu1 %vm195_vm2, %v652_v31 }
 0x2e1   :  { %934 = vmatpush.msra.mxu1 %v2261_v39  ;;  %1011 = vmatpush.msrb.mxu3 %v2275_v19  ;;  %v380_v39 = vld [vmem:[%s2877_s1 + $0xb8] sm:$0xff] }
 0x2e2   :  { %864 = vmatmul.f32.vlgmr.msra.gmra.mxu3 %v381_v51 }
 0x2e3   :  { %935 = vmatpush.msra.mxu1 %v2266_v0  ;;  %v389_v0 = vld [vmem:[%s2877_s1 + $0x100] sm:$0xff] }
 0x2e5   :  { %936 = vmatpush.msra.mxu1 %v2271_v10  ;;  %v385_v10 = vld [vmem:[%s2877_s1 + $0xe0] sm:$0xff] }
 0x2e7   :  { %937 = vmatpush.msra.mxu1 %v2275_v19  ;;  %v390_v19 = vld [vmem:[%s2877_s1 + $0x108] sm:$0xff] }
 0x2e8   :  { %790 = vmatmul.f32.vlgmr.msrb.gmra.mxu1 %v377_v54 }
 0x2e9   :  { %1806 = vmatpush.msrb.mxu1 %v410_v17 }
 0x2ea   :  { %867 = vmatmul.f32.gmra.mxu3 %v382_v58 }
 0x2eb   :  { %1807 = vmatpush.msrb.mxu1 %v409_v12 }
 0x2f0   :  { %793 = vmatmul.f32.gmra.mxu1 %v378_v13 }
 0x2f2   :  { %870 = vmatmul.f32.gmra.mxu3 %v383_v59 }
 0x2f8   :  { %796 = vmatmul.f32.gmra.mxu1 %v379_v62 }
 0x2fa   :  { %873 = vmatmul.f32.gmra.mxu3 %v384_v63  ;;  %v2619_v63 = vld [vmem:[%s2883_s7] sm:$0x7] }
 0x300   :  { %799 = vmatmul.f32.gmra.mxu1 %v380_v39 }
 0x302   :  { %1012 = vmatmul.f32.vlgmr.msrb.gmra.mxu3 %v389_v0 }
 0x308   :  { %938 = vmatmul.f32.vlgmr.msra.gmra.mxu1 %v385_v10  ;;  %v1070_v10 = vperm.slane %v2619_v63, 0 }
 0x30a   :  { %1015 = vmatmul.f32.gmra.mxu3 %v390_v19 }
 0x310   :  { %941 = vmatmul.f32.gmra.mxu1 %v386_v11 }
 0x312   :  { %1018 = vmatmul.f32.gmra.mxu3 %v391_v38 }
 0x318   :  { %944 = vmatmul.f32.gmra.mxu1 %v387_v40 }
 0x31a   :  { %1021 = vmatmul.f32.gmra.mxu3 %v392_v43 }
 0x320   :  { %947 = vmatmul.f32.gmra.mxu1 %v388_v48 }
 0x345   :  { %v684_v25 = vpop.f32.mrf.mxu1  ;;  %v758_v56 = vpop.f32.mrf.mxu3 }
 0x346   :  { %v696_v28 = vadd.f32 %v684_v25, %v622_v24 }
 0x348   :  { %v2576_v60 = vadd.f32 %v758_v56, %v696_v28 }
 0x34d   :  { %v687_v29 = vpop.f32.mrf.mxu1  ;;  %v761_v30 = vpop.f32.mrf.mxu3 }
 0x34e   :  { %v697_v1 = vadd.f32 %v687_v29, %v2467_v14 }
 0x350   :  { %v2579_v34 = vadd.f32 %v761_v30, %v697_v1 }
 0x355   :  { %v690_v7 = vpop.f32.mrf.mxu1  ;;  %v764_v42 = vpop.f32.mrf.mxu3 }
 0x356   :  { %v698_v46 = vadd.f32 %v690_v7, %v2469_v18  ;;  %v1852_v7 = vmov 32.0  }
 0x357   :  { %1817 = vrcp.f32 %v1852_v7 }
 0x358   :  { %v2582_v2 = vadd.f32 %v764_v42, %v698_v46 }
 0x35d   :  { %v693_v57 = vpop.f32.mrf.mxu1  ;;  %v767_v61 = vpop.f32.mrf.mxu3 }
 0x35e   :  { %v699_v55 = vadd.f32 %v693_v57, %v2472_v33 }
 0x360   :  { %v2588_v49 = vadd.f32 %v767_v61, %v699_v55 }
 0x365   :  { %v791_v52 = vpop.f32.mrf.mxu1  ;;  %v865_v41 = vpop.f32.mrf.mxu3 }
 0x366   :  { %1770 = vmatmul.msk.f32.vlgmr.msrb.gmra.mxu2 %vm195_vm2, %v791_v52  ;;  %1774 = vmatmul.msk.f32.vlgmr.msrb.gmra.mxu0 %vm195_vm2, %v865_v41  ;;  %v1818_v52 = vpop.eup %1817 }
 0x367   :  { %vm1098_vm8 = vweird.f32 %v1818_v52 }
 0x36d   :  { %v794_v16 = vpop.f32.mrf.mxu1  ;;  %v868_v15 = vpop.f32.mrf.mxu3 }
 0x36e   :  { %1771 = vmatmul.msk.f32.gmra.mxu2 %vm195_vm2, %v794_v16  ;;  %1775 = vmatmul.msk.f32.gmra.mxu0 %vm195_vm2, %v868_v15  ;;  %v1094_v16 = vmul.f32 32.0, %v1818_v52 }
 0x375   :  { %v797_v3 = vpop.f32.mrf.mxu1  ;;  %v871_v4 = vpop.f32.mrf.mxu3 }
 0x376   :  { %1772 = vmatmul.msk.f32.gmra.mxu2 %vm195_vm2, %v797_v3  ;;  %1776 = vmatmul.msk.f32.gmra.mxu0 %vm195_vm2, %v871_v4 }
 0x37d   :  { %v800_v14 = vpop.f32.mrf.mxu1  ;;  %v874_v23 = vpop.f32.mrf.mxu3 }
 0x37e   :  { %1773 = vmatmul.msk.f32.gmra.mxu2 %vm195_vm2, %v800_v14  ;;  %1777 = vmatmul.msk.f32.gmra.mxu0 %vm195_vm2, %v874_v23 }
 0x385   :  { %v939_v32 = vpop.f32.mrf.mxu1  ;;  %v1013_v8 = vpop.f32.mrf.mxu3 }
 0x386   :  { %1778 = vmatmul.msk.f32.vlgmr.msra.gmra.mxu2 %vm195_vm2, %v939_v32  ;;  %1782 = vmatmul.msk.f32.vlgmr.msra.gmra.mxu0 %vm195_vm2, %v1013_v8 }
 0x38d   :  { %v942_v18 = vpop.f32.mrf.mxu1  ;;  %v1016_v20 = vpop.f32.mrf.mxu3 }
 0x38e   :  { %1779 = vmatmul.msk.f32.gmra.mxu2 %vm195_vm2, %v942_v18  ;;  %1783 = vmatmul.msk.f32.gmra.mxu0 %vm195_vm2, %v1016_v20 }
 0x395   :  { %v945_v26 = vpop.f32.mrf.mxu1  ;;  %v1019_v35 = vpop.f32.mrf.mxu3 }
 0x396   :  { %1780 = vmatmul.msk.f32.gmra.mxu2 %vm195_vm2, %v945_v26  ;;  %1784 = vmatmul.msk.f32.gmra.mxu0 %vm195_vm2, %v1019_v35 }
 0x39d   :  { %v948_v33 = vpop.f32.mrf.mxu1  ;;  %v1022_v37 = vpop.f32.mrf.mxu3 }
 0x39e   :  { %1781 = vmatmul.msk.f32.gmra.mxu2 %vm195_vm2, %v948_v33  ;;  %1785 = vmatmul.msk.f32.vlgmr.msrb.gmra.mxu1 %vm195_vm2, %v1022_v37  ;;  %vm1715_vm2 = vcmask 91136  }
 0x3e3   :  { %v906_v45 = vpop.f32.mrf.mxu0 }
 0x3e9   :  { %v832_v50 = vpop.f32.mrf.mxu2 }
 0x3ea   :  { %v844_v58 = vadd.f32 %v832_v50, %v2576_v60 }
 0x3eb   :  { %v909_v5 = vpop.f32.mrf.mxu0 }
 0x3ec   :  { %v918_v13 = vadd.f32 %v906_v45, %v844_v58 }
 0x3f1   :  { %v835_v47 = vpop.f32.mrf.mxu2 }
 0x3f2   :  { %v845_v39 = vadd.f32 %v835_v47, %v2579_v34 }
 0x3f3   :  { %v912_v9 = vpop.f32.mrf.mxu0 }
 0x3f4   :  { %v919_v11 = vadd.f32 %v909_v5, %v845_v39 }
 0x3f9   :  { %v838_v31 = vpop.f32.mrf.mxu2 }
 0x3fa   :  { %v846_v48 = vadd.f32 %v838_v31, %v2582_v2 }
 0x3fb   :  { %v915_v51 = vpop.f32.mrf.mxu0 }
 0x3fc   :  { %v920_v24 = vadd.f32 %v912_v9, %v846_v48  ;;  %v1159_v48 = vld [vmem:[%s2881_s5 + $0x28] sm:$0xff] }
 0x401   :  { %v841_v54 = vpop.f32.mrf.mxu2 }
 0x402   :  { %v847_v1 = vadd.f32 %v841_v54, %v2588_v49  ;;  %v1095_v49 = vsub.f32 1.0, %v1094_v16  ;;  %v1165_v16 = vld [vmem:[%s2881_s5 + $0x58] sm:$0xff] }
 0x403   :  { %v1054_v6 = vpop.f32.mrf.mxu0 }
 0x404   :  { %v921_v46 = vadd.f32 %v915_v51, %v847_v1  ;;  %v1096_v14 = vmul.f32 %v1818_v52, %v1095_v49  ;;  %v1163_v49 = vld [vmem:[%s2881_s5 + $0x48] sm:$0xff] }
 0x406   :  { %v1097_v8 = vadd.f32 %v1818_v52, %v1096_v14  ;;  %v1155_v14 = vld [vmem:[%s2881_s5 + $0x8] sm:$0xff] }
 0x408   :  { %v1099_v26 = vsel %vm1098_vm8, %v1818_v52, %v1097_v8  ;;  %v1146_v52 = vld [vmem:[%s2878_s2 + $0x8] sm:$0xff]  ;;  %v1153_v8 = vld [vmem:[%s2878_s2 + $0x40] sm:$0xff] }
 0x409   :  { %v980_v59 = vpop.f32.mrf.mxu2 }
 0x40a   :  { %v992_v62 = vadd.f32 %v980_v59, %v918_v13 }
 0x40b   :  { %v1057_v19 = vpop.f32.mrf.mxu0 }
 0x40c   :  { %v1066_v0 = vadd.f32 %v1054_v6, %v992_v62 }
 0x40e   :  { %v1071_v40 = vadd.f32 %v1070_v10, %v1066_v0 }
 0x410   :  { %v1075_v44 = vmax.f32 %v1071_v40, 0.0  ;;  %v1160_v40 = vld [vmem:[%s2881_s5 + $0x30] sm:$0xff] }
 0x411   :  { %v983_v38 = vpop.f32.mrf.mxu2 }
 0x412   :  { %v993_v43 = vadd.f32 %v983_v38, %v919_v11  ;;  %v1080_v28 = vsel %vm1079_vm7, %v1075_v44, 0.0  ;;  %v1161_v11 = vld [vmem:[%s2881_s5 + $0x38] sm:$0xff] }
 0x413   :  { %v1060_v27 = vpop.f32.mrf.mxu0  ;;  %1252 = vmatpush.msra.mxu3 %v1161_v11  ;;  %v1189_v11 = vld [vmem:[%s2881_s5 + $0x118] sm:$0xff] }
 0x414   :  { %v1067_v21 = vadd.f32 %v1057_v19, %v993_v43 }
 0x415   :  { %1253 = vmatpush.msra.mxu3 %v1160_v40  ;;  %v1188_v40 = vld [vmem:[%s2881_s5 + $0x110] sm:$0xff] }
 0x416   :  { %v1072_v22 = vadd.f32 %v1070_v10, %v1067_v21  ;;  %v1158_v21 = vld [vmem:[%s2881_s5 + $0x20] sm:$0xff] }
 0x417   :  { %1254 = vmatpush.msra.mxu3 %v1159_v48  ;;  %v1186_v48 = vld [vmem:[%s2881_s5 + $0x100] sm:$0xff] }
 0x418   :  { %v1076_v25 = vmax.f32 %v1072_v22, 0.0 }
 0x419   :  { %v986_v56 = vpop.f32.mrf.mxu2  ;;  %1255 = vmatpush.msra.mxu3 %v1158_v21 }
 0x41a   :  { %v1081_v60 = vsel %vm1079_vm7, %v1076_v25, 0.0  ;;  %v994_v29 = vadd.f32 %v986_v56, %v920_v24 }
 0x41b   :  { %v1082_v30 = vadd.f32 %v1081_v60, %v1080_v28  ;;  %v1063_v61 = vpop.f32.mrf.mxu1 }
 0x41c   :  { %v1068_v34 = vadd.f32 %v1060_v27, %v994_v29 }
 0x41e   :  { %v1073_v42 = vadd.f32 %v1070_v10, %v1068_v34  ;;  %v1140_v34 = vperm.slane %v2619_v63, 2 }
 0x420   :  { %v1077_v2 = vmax.f32 %v1073_v42, 0.0 }
 0x421   :  { %v989_v57 = vpop.f32.mrf.mxu2 }
 0x422   :  { %v1083_v55 = vsel %vm1079_vm7, %v1077_v2, 0.0  ;;  %v995_v53 = vadd.f32 %v989_v57, %v921_v46 }
 0x423   :  { %v1084_v41 = vadd.f32 %v1083_v55, %v1082_v30 }
 0x424   :  { %v1069_v36 = vadd.f32 %v1063_v61, %v995_v53 }
 0x426   :  { %v1074_v17 = vadd.f32 %v1070_v10, %v1069_v36  ;;  %v1147_v36 = vld [vmem:[%s2878_s2 + $0x10] sm:$0xff] }
 0x428   :  { %v1078_v15 = vmax.f32 %v1074_v17, 0.0  ;;  %v1149_v17 = vld [vmem:[%s2878_s2 + $0x20] sm:$0xff] }
 0x42a   :  { %v1085_v12 = vsel %vm1079_vm7, %v1078_v15, 0.0 }
 0x42b   :  { %v1086_v3 = vadd.f32 %v1085_v12, %v1084_v41  ;;  %v1145_v41 = vld [vmem:[%s2878_s2] sm:$0xff]  ;;  %v1157_v12 = vld [vmem:[%s2881_s5 + $0x18] sm:$0xff] }
 0x42c   :  { %1275 = vmatpush.msrb.mxu0 %v1157_v12 }
 0x42d   :  { %v1087_v4 = vrot.slane %v1086_v3, 4 }
 0x42f   :  { %v1088_v23 = vadd.f32 %v1087_v4, %v1086_v3  ;;  %v1156_v3 = vld [vmem:[%s2881_s5 + $0x10] sm:$0xff]  ;;  %v1162_v4 = vld [vmem:[%s2881_s5 + $0x40] sm:$0xff] }
 0x430   :  { %1276 = vmatpush.msrb.mxu0 %v1156_v3 }
 0x431   :  { %v1089_v32 = vrot.slane %v1088_v23, 2 }
 0x432   :  { %1277 = vmatpush.msrb.mxu0 %v1155_v14 }
 0x433   :  { %v1090_v18 = vadd.f32 %v1089_v32, %v1088_v23  ;;  %v1154_v23 = vld [vmem:[%s2881_s5] sm:$0xff]  ;;  %v1151_v32 = vld [vmem:[%s2878_s2 + $0x30] sm:$0xff] }
 0x434   :  { %1278 = vmatpush.msrb.mxu0 %v1154_v23 }
 0x435   :  { %v1091_v20 = vrot.slane %v1090_v18, 1 }
 0x437   :  { %v1092_v35 = vadd.f32 %v1091_v20, %v1090_v18  ;;  %v1173_v18 = vld [vmem:[%s2881_s5 + $0x98] sm:$0xff] }
 0x439   :  { %v1100_v33 = vmul.f32 %v1099_v26, %v1092_v35 }
 0x43b   :  { %v1101_v37 = vsub.f32 %v1075_v44, %v1100_v33  ;;  %v1102_v45 = vsub.f32 %v1076_v25, %v1100_v33  ;;  %v1103_v50 = vsub.f32 %v1077_v2, %v1100_v33  ;;  %v1104_v5 = vsub.f32 %v1078_v15, %v1100_v33  ;;  %v1164_v15 = vld [vmem:[%s2881_s5 + $0x50] sm:$0xff]  ;;  %v1148_v33 = vld [vmem:[%s2878_s2 + $0x18] sm:$0xff] }
 0x43d   :  { %v1105_v47 = vmul.f32 %v1101_v37, %v1101_v37  ;;  %v1106_v9 = vmul.f32 %v1102_v45, %v1102_v45  ;;  %v1107_v31 = vmul.f32 %v1103_v50, %v1103_v50  ;;  %v1108_v51 = vmul.f32 %v1104_v5, %v1104_v5 }
 0x43f   :  { %v1109_v54 = vsel %vm1079_vm7, %v1105_v47, 0.0  ;;  %v1110_v58 = vsel %vm1079_vm7, %v1106_v9, 0.0  ;;  %v1112_v13 = vsel %vm1079_vm7, %v1107_v31, 0.0  ;;  %v1114_v62 = vsel %vm1079_vm7, %v1108_v51, 0.0  ;;  %v1171_v47 = vld [vmem:[%s2881_s5 + $0x88] sm:$0xff]  ;;  %v1168_v9 = vld [vmem:[%s2881_s5 + $0x70] sm:$0xff] }
 0x440   :  { %v1111_v6 = vadd.f32 %v1110_v58, %v1109_v54  ;;  %v1170_v51 = vld [vmem:[%s2881_s5 + $0x80] sm:$0xff]  ;;  %v1167_v54 = vld [vmem:[%s2881_s5 + $0x68] sm:$0xff]  ;;  %v1181_v58 = vld [vmem:[%s2881_s5 + $0xd8] sm:$0xff] }
 0x442   :  { %v1113_v59 = vadd.f32 %v1112_v13, %v1111_v6  ;;  %v1166_v6 = vld [vmem:[%s2881_s5 + $0x60] sm:$0xff]  ;;  %v1180_v13 = vld [vmem:[%s2881_s5 + $0xd0] sm:$0xff] }
 0x444   :  { %v1115_v39 = vadd.f32 %v1114_v62, %v1113_v59  ;;  %v1177_v59 = vld [vmem:[%s2881_s5 + $0xb8] sm:$0xff]  ;;  %v1179_v62 = vld [vmem:[%s2881_s5 + $0xc8] sm:$0xff] }
 0x446   :  { %v1116_v0 = vrot.slane %v1115_v39, 4 }
 0x448   :  { %v1117_v10 = vadd.f32 %v1116_v0, %v1115_v39  ;;  %v1176_v39 = vld [vmem:[%s2881_s5 + $0xb0] sm:$0xff]  ;;  %v1178_v0 = vld [vmem:[%s2881_s5 + $0xc0] sm:$0xff] }
 0x44a   :  { %v1118_v19 = vrot.slane %v1117_v10, 2 }
 0x44c   :  { %v1119_v38 = vadd.f32 %v1118_v19, %v1117_v10  ;;  %v1175_v19 = vld [vmem:[%s2881_s5 + $0xa8] sm:$0xff] }
 0x44e   :  { %v1120_v43 = vrot.slane %v1119_v38, 1 }
 0x450   :  { %v1121_v44 = vadd.f32 %v1120_v43, %v1119_v38  ;;  %v1174_v38 = vld [vmem:[%s2881_s5 + $0xa0] sm:$0xff]  ;;  %v1187_v43 = vld [vmem:[%s2881_s5 + $0x108] sm:$0xff] }
 0x452   :  { %v1122_v22 = vmul.f32 %v1121_v44, %v1099_v26 }
 0x454   :  { %v1123_v24 = vadd.f32 1e-05, %v1122_v22  ;;  %v1185_v22 = vld [vmem:[%s2881_s5 + $0xf8] sm:$0xff] }
 0x456   :  { %1819 = vrsqrt.f32 %v1123_v24  ;;  %vm1130_vm10 = vweird.f32 %v1123_v24 }
 0x45c   :  { %v1820_v25 = vpop.eup %1819 }
 0x45d   :  { %v1125_v56 = vmul.f32 %v1820_v25, %v1123_v24  ;;  %vm1131_vm9 = vweird.f32 %v1820_v25 }
 0x45e   :  { %vm1132_vm11 = vmor %vm1130_vm10, %vm1131_vm9 }
 0x45f   :  { %v1126_v27 = vmul.f32 %v1820_v25, %v1125_v56  ;;  %v1183_v56 = vld [vmem:[%s2881_s5 + $0xe8] sm:$0xff] }
 0x461   :  { %v1127_v28 = vmul.f32 0.5, %v1126_v27  ;;  %v1182_v27 = vld [vmem:[%s2881_s5 + $0xe0] sm:$0xff] }
 0x463   :  { %v1128_v60 = vsub.f32 1.5, %v1127_v28 }
 0x465   :  { %v1129_v29 = vmul.f32 %v1820_v25, %v1128_v60 }
 0x467   :  { %v1133_v30 = vsel %vm1132_vm11, %v1820_v25, %v1129_v29  ;;  %v1184_v25 = vld [vmem:[%s2881_s5 + $0xf0] sm:$0xff] }
 0x468   :  { %v1134_v1 = vmul.f32 %v1133_v30, %v2619_v63 }
 0x46a   :  { %v1135_v7 = vperm.slane %v1134_v1, 1 }
 0x46c   :  { %v1136_v42 = vmul.f32 %v1135_v7, %v1101_v37  ;;  %v1137_v46 = vmul.f32 %v1135_v7, %v1102_v45  ;;  %v1138_v2 = vmul.f32 %v1135_v7, %v1103_v50  ;;  %v1139_v57 = vmul.f32 %v1135_v7, %v1104_v5  ;;  %v1150_v37 = vld [vmem:[%s2878_s2 + $0x28] sm:$0xff]  ;;  %v1152_v45 = vld [vmem:[%s2878_s2 + $0x38] sm:$0xff]  ;;  %v1172_v50 = vld [vmem:[%s2881_s5 + $0x90] sm:$0xff] }
 0x46d   :  { %v1169_v5 = vld [vmem:[%s2881_s5 + $0x78] sm:$0xff] }
 0x46e   :  { %v2647_v61 = vadd.f32 %v1140_v34, %v1139_v57  ;;  %v2649_v55 = vadd.f32 %v1140_v34, %v1138_v2  ;;  %v2654_v53 = vadd.f32 %v1140_v34, %v1137_v46  ;;  %v2659_v63 = vadd.f32 %v1140_v34, %v1136_v42  ;;  %1368 = vmatpush.msra.mxu0 %v1169_v5 }
 0x470   :  { %1206 = vmatpush.msra.mxu1 %v2647_v61  ;;  %1229 = vmatpush.msrb.mxu2 %v2647_v61 }
 0x471   :  { %1345 = vmatpush.msrb.mxu3 %v2647_v61  ;;  %1369 = vmatpush.msra.mxu0 %v1168_v9 }
 0x472   :  { %1207 = vmatpush.msra.mxu1 %v2649_v55  ;;  %1230 = vmatpush.msrb.mxu2 %v2649_v55 }
 0x473   :  { %1346 = vmatpush.msrb.mxu3 %v2649_v55  ;;  %1370 = vmatpush.msra.mxu0 %v1167_v54 }
 0x474   :  { %1208 = vmatpush.msra.mxu1 %v2654_v53  ;;  %1231 = vmatpush.msrb.mxu2 %v2654_v53 }
 0x475   :  { %1347 = vmatpush.msrb.mxu3 %v2654_v53  ;;  %1371 = vmatpush.msra.mxu0 %v1166_v6 }
 0x476   :  { %1209 = vmatpush.msra.mxu1 %v2659_v63  ;;  %1232 = vmatpush.msrb.mxu2 %v2659_v63 }
 0x477   :  { %1348 = vmatpush.msrb.mxu3 %v2659_v63  ;;  %1787 = vmatmul.msk.f32.vlgmr.msrb.gmra.mxu2 %vm1079_vm7, %v1146_v52 }
 0x478   :  { %1298 = vmatpush.msrb.mxu1 %v2647_v61  ;;  %1321 = vmatpush.msra.mxu2 %v1165_v16 }
 0x479   :  { %1786 = vmatmul.msk.f32.vlgmr.msra.gmra.mxu1 %vm1079_vm7, %v1145_v41 }
 0x47a   :  { %1299 = vmatpush.msrb.mxu1 %v2649_v55  ;;  %1322 = vmatpush.msra.mxu2 %v1164_v15 }
 0x47c   :  { %1300 = vmatpush.msrb.mxu1 %v2654_v53  ;;  %1323 = vmatpush.msra.mxu2 %v1163_v49 }
 0x47e   :  { %1301 = vmatpush.msrb.mxu1 %v2659_v63  ;;  %1324 = vmatpush.msra.mxu2 %v1162_v4 }
 0x480   :  { %1392 = vmatpush.msra.mxu1 %v2647_v61  ;;  %1415 = vmatpush.msrb.mxu2 %v1173_v18 }
 0x481   :  { %1790 = vmatmul.msk.f32.vlgmr.msrb.gmra.mxu1 %vm1079_vm7, %v1147_v36 }
 0x482   :  { %1393 = vmatpush.msra.mxu1 %v2649_v55  ;;  %1416 = vmatpush.msrb.mxu2 %v1172_v50 }
 0x484   :  { %1394 = vmatpush.msra.mxu1 %v2654_v53  ;;  %1417 = vmatpush.msrb.mxu2 %v1171_v47 }
 0x486   :  { %1395 = vmatpush.msra.mxu1 %v2659_v63  ;;  %1418 = vmatpush.msrb.mxu2 %v1170_v51 }
 0x488   :  { %1486 = vmatpush.msrb.mxu1 %v2647_v61 }
 0x489   :  { %1794 = vmatmul.msk.f32.vlgmr.msra.gmra.mxu1 %vm1079_vm7, %v1149_v17 }
 0x48a   :  { %1487 = vmatpush.msrb.mxu1 %v2649_v55 }
 0x48c   :  { %1488 = vmatpush.msrb.mxu1 %v2654_v53 }
 0x48e   :  { %1489 = vmatpush.msrb.mxu1 %v2659_v63 }
 0x490   :  { %1580 = vmatpush.msra.mxu1 %v2647_v61 }
 0x491   :  { %1798 = vmatmul.msk.f32.vlgmr.msrb.gmra.mxu1 %vm1079_vm7, %v1151_v32 }
 0x492   :  { %1581 = vmatpush.msra.mxu1 %v2649_v55 }
 0x494   :  { %1582 = vmatpush.msra.mxu1 %v2654_v53 }
 0x496   :  { %1583 = vmatpush.msra.mxu1 %v2659_v63 }
 0x499   :  { %1802 = vmatmul.msk.f32.vlgmr.msra.gmra.mxu1 %vm1079_vm7, %v1153_v8 }
 0x4f6   :  { %v1211_v20 = vpop.f32.mrf.mxu1 }
 0x4f7   :  { %1789 = vmatmul.msk.f32.vlgmr.msrb.gmra.mxu0 %vm1079_vm7, %v1211_v20 }
 0x4f8   :  { %1462 = vmatpush.msrb.mxu0 %v1177_v59  ;;  %v1664_v59 = vld [vmem:[%s2886_s10 + $0x38] sm:$0xff] }
 0x4fa   :  { %v1234_v26 = vpop.f32.mrf.mxu2  ;;  %1463 = vmatpush.msrb.mxu0 %v1176_v39 }
 0x4fb   :  { %1788 = vmatmul.msk.f32.vlgmr.msra.gmra.mxu3 %vm1079_vm7, %v1234_v26 }
 0x4fc   :  { %1439 = vmatpush.msra.mxu3 %v2647_v61  ;;  %1464 = vmatpush.msrb.mxu0 %v1175_v19  ;;  %v1661_v19 = vld [vmem:[%s2886_s10 + $0x20] sm:$0xff] }
 0x4fe   :  { %1440 = vmatpush.msra.mxu3 %v2649_v55  ;;  %v1303_v35 = vpop.f32.mrf.mxu1  ;;  %1465 = vmatpush.msrb.mxu0 %v1174_v38  ;;  %v1659_v38 = vld [vmem:[%s2886_s10 + $0x10] sm:$0xff] }
 0x4ff   :  { %1791 = vmatmul.msk.f32.vlgmr.msra.gmra.mxu2 %vm1079_vm7, %v1303_v35 }
 0x500   :  { %1441 = vmatpush.msra.mxu3 %v2654_v53  ;;  %1509 = vmatpush.msra.mxu2 %v1181_v58 }
 0x502   :  { %1442 = vmatpush.msra.mxu3 %v2659_v63  ;;  %1510 = vmatpush.msra.mxu2 %v1180_v13 }
 0x503   :  { %1792 = vmatmul.msk.f32.vlgmr.msrb.gmra.mxu3 %vm1079_vm7, %v1148_v33 }
 0x504   :  { %1533 = vmatpush.msrb.mxu3 %v2647_v61  ;;  %1511 = vmatpush.msra.mxu2 %v1179_v62  ;;  %v1663_v62 = vld [vmem:[%s2886_s10 + $0x30] sm:$0xff] }
 0x506   :  { %1534 = vmatpush.msrb.mxu3 %v2649_v55  ;;  %v1397_v31 = vpop.f32.mrf.mxu1  ;;  %1512 = vmatpush.msra.mxu2 %v1178_v0  ;;  %v1853_v55 = vmov 8.0   ;;  %v1662_v0 = vld [vmem:[%s2886_s10 + $0x28] sm:$0xff] }
 0x507   :  { %1795 = vmatmul.msk.f32.vlgmr.msrb.gmra.mxu2 %vm1079_vm7, %v1397_v31  ;;  %1821 = vrcp.f32 %v1853_v55 }
 0x508   :  { %1535 = vmatpush.msrb.mxu3 %v2654_v53  ;;  %1603 = vmatpush.msrb.mxu2 %v1189_v11  ;;  %v1660_v11 = vld [vmem:[%s2886_s10 + $0x18] sm:$0xff] }
 0x50a   :  { %1536 = vmatpush.msrb.mxu3 %v2659_v63  ;;  %1604 = vmatpush.msrb.mxu2 %v1188_v40  ;;  %v2835_v63 = vld [vmem:[%s2884_s8] sm:$0x7]  ;;  %v1658_v40 = vld [vmem:[%s2886_s10 + $0x8] sm:$0xff] }
 0x50b   :  { %1796 = vmatmul.msk.f32.vlgmr.msra.gmra.mxu3 %vm1079_vm7, %v1150_v37  ;;  %v1612_v15 = vperm.slane %v2835_v63, 0 }
 0x50c   :  { %1605 = vmatpush.msrb.mxu2 %v1187_v43 }
 0x50d   :  { %v1822_v41 = vpop.eup %1821 }
 0x50e   :  { %v1491_v10 = vpop.f32.mrf.mxu1  ;;  %1606 = vmatpush.msrb.mxu2 %v1186_v48  ;;  %v1624_v49 = vmul.f32 8.0, %v1822_v41  ;;  %vm1628_vm13 = vweird.f32 %v1822_v41 }
 0x50f   :  { %1799 = vmatmul.msk.f32.vlgmr.msra.gmra.mxu2 %vm1079_vm7, %v1491_v10 }
 0x510   :  { %v1625_v14 = vsub.f32 1.0, %v1624_v49 }
 0x512   :  { %v1626_v8 = vmul.f32 %v1822_v41, %v1625_v14 }
 0x513   :  { %1800 = vmatmul.msk.f32.vlgmr.msrb.gmra.mxu3 %vm1079_vm7, %v1152_v45 }
 0x514   :  { %v1627_v26 = vadd.f32 %v1822_v41, %v1626_v8 }
 0x516   :  { %v1585_v21 = vpop.f32.mrf.mxu1  ;;  %v1629_v37 = vsel %vm1628_vm13, %v1822_v41, %v1627_v26 }
 0x517   :  { %1803 = vmatmul.msk.f32.vlgmr.msrb.gmra.mxu2 %vm1079_vm7, %v1585_v21 }
 0x574   :  { %v1280_v30 = vpop.f32.mrf.mxu0 }
 0x57e   :  { %v1257_v44 = vpop.f32.mrf.mxu3 }
 0x57f   :  { %v1281_v34 = vadd.f32 %v1280_v30, %v1257_v44  ;;  %v1666_v30 = vld [vmem:[%s2885_s9] sm:$0x3]  ;;  %s1724_s9 = sshll.u32 %s2887_s11, 4  ;;  %s1725_s9 = int_to_ptr.hbm [resolvable:$true] %s1724_s9 }
 0x582   :  { %v1326_v29 = vpop.f32.mrf.mxu2 }
 0x583   :  { %v1329_v42 = vadd.f32 %v1326_v29, %v1281_v34 }
 0x586   :  { %v1350_v24 = vpop.f32.mrf.mxu3 }
 0x587   :  { %1793 = vmatmul.msk.f32.vlgmr.msra.gmra.mxu0 %vm1079_vm7, %v1350_v24 }
 0x588   :  { %1556 = vmatpush.msra.mxu0 %v1185_v22 }
 0x58a   :  { %1557 = vmatpush.msra.mxu0 %v1184_v25  ;;  %v1420_v1 = vpop.f32.mrf.mxu2 }
 0x58c   :  { %1558 = vmatpush.msra.mxu0 %v1183_v56 }
 0x58e   :  { %v1444_v28 = vpop.f32.mrf.mxu3  ;;  %1559 = vmatpush.msra.mxu0 %v1182_v27 }
 0x58f   :  { %1797 = vmatmul.msk.f32.vlgmr.msrb.gmra.mxu0 %vm1079_vm7, %v1444_v28  ;;  %v1655_v28 = vperm.slane %v2835_v63, 2 }
 0x590   :  { %1703 = vmatpush.msrb.mxu0 %v1664_v59 }
 0x592   :  { %v1514_v2 = vpop.f32.mrf.mxu2  ;;  %1704 = vmatpush.msrb.mxu0 %v1663_v62 }
 0x594   :  { %1705 = vmatpush.msrb.mxu0 %v1662_v0 }
 0x596   :  { %v1538_v60 = vpop.f32.mrf.mxu3  ;;  %1706 = vmatpush.msrb.mxu0 %v1661_v19 }
 0x597   :  { %1801 = vmatmul.msk.f32.vlgmr.msra.gmra.mxu0 %vm1079_vm7, %v1538_v60 }
 0x598   :  { %1707 = vmatpush.msrb.mxu0 %v1660_v11 }
 0x59a   :  { %v1608_v17 = vpop.f32.mrf.mxu2  ;;  %1708 = vmatpush.msrb.mxu0 %v1659_v38 }
 0x59c   :  { %1709 = vmatpush.msrb.mxu0 %v1658_v40 }
 0x604   :  { %v1373_v7 = vpop.f32.mrf.mxu0 }
 0x605   :  { %v1376_v46 = vadd.f32 %v1373_v7, %v1329_v42  ;;  %v1812_v7 = vld [vmem:[%s2886_s10 + $0x40] ss:$0 sm:$0xff] }
 0x607   :  { %v1423_v61 = vadd.f32 %v1420_v1, %v1376_v46  ;;  %v1657_v1 = vld [vmem:[%s2886_s10] sm:$0xff] }
 0x608   :  { %1710 = vmatpush.msrb.mxu0 %v1657_v1 }
 0x60c   :  { %v1467_v57 = vpop.f32.mrf.mxu0 }
 0x60d   :  { %v1470_v53 = vadd.f32 %v1467_v57, %v1423_v61 }
 0x60f   :  { %v1517_v52 = vadd.f32 %v1514_v2, %v1470_v53 }
 0x614   :  { %v1561_v36 = vpop.f32.mrf.mxu0 }
 0x615   :  { %v1564_v16 = vadd.f32 %v1561_v36, %v1517_v52 }
 0x617   :  { %v1611_v12 = vadd.f32 %v1608_v17, %v1564_v16 }
 0x619   :  { %v1613_v3 = vadd.f32 %v1612_v15, %v1611_v12 }
 0x61b   :  { %v1614_v4 = vmax.f32 %v1613_v3, 0.0 }
 0x61d   :  { %v1616_v23 = vsel %vm1615_vm12, %v1614_v4, 0.0 }
 0x61e   :  { %v1617_v32 = vrot.slane %v1616_v23, 4 }
 0x620   :  { %v1618_v18 = vadd.f32 %v1617_v32, %v1616_v23 }
 0x622   :  { %v1619_v20 = vrot.slane %v1618_v18, 2 }
 0x624   :  { %v1620_v35 = vadd.f32 %v1619_v20, %v1618_v18 }
 0x626   :  { %v1621_v33 = vrot.slane %v1620_v35, 1 }
 0x628   :  { %v1622_v45 = vadd.f32 %v1621_v33, %v1620_v35 }
 0x62a   :  { %v1630_v50 = vmul.f32 %v1629_v37, %v1622_v45 }
 0x62c   :  { %v1631_v5 = vsub.f32 %v1614_v4, %v1630_v50 }
 0x62e   :  { %v1632_v47 = vmul.f32 %v1631_v5, %v1631_v5 }
 0x630   :  { %v1633_v9 = vsel %vm1615_vm12, %v1632_v47, 0.0 }
 0x631   :  { %v1634_v31 = vrot.slane %v1633_v9, 4 }
 0x633   :  { %v1635_v51 = vadd.f32 %v1634_v31, %v1633_v9 }
 0x635   :  { %v1636_v54 = vrot.slane %v1635_v51, 2 }
 0x637   :  { %v1637_v58 = vadd.f32 %v1636_v54, %v1635_v51 }
 0x639   :  { %v1638_v6 = vrot.slane %v1637_v58, 1 }
 0x63b   :  { %v1639_v13 = vadd.f32 %v1638_v6, %v1637_v58 }
 0x63d   :  { %v1640_v39 = vmul.f32 %v1639_v13, %v1629_v37 }
 0x63f   :  { %v1641_v10 = vadd.f32 1e-05, %v1640_v39 }
 0x641   :  { %1823 = vrsqrt.f32 %v1641_v10  ;;  %vm1648_vm15 = vweird.f32 %v1641_v10 }
 0x647   :  { %v1824_v43 = vpop.eup %1823 }
 0x648   :  { %v1643_v48 = vmul.f32 %v1824_v43, %v1641_v10  ;;  %vm1649_vm14 = vweird.f32 %v1824_v43 }
 0x649   :  { %vm1650_vm0 = vmor %vm1648_vm15, %vm1649_vm14 }
 0x64a   :  { %v1644_v21 = vmul.f32 %v1824_v43, %v1643_v48 }
 0x64c   :  { %v1645_v44 = vmul.f32 0.5, %v1644_v21 }
 0x64e   :  { %v1646_v22 = vsub.f32 1.5, %v1645_v44 }
 0x650   :  { %v1647_v24 = vmul.f32 %v1824_v43, %v1646_v22 }
 0x652   :  { %v1651_v25 = vsel %vm1650_vm0, %v1824_v43, %v1647_v24 }
 0x653   :  { %v1652_v56 = vmul.f32 %v1651_v25, %v2835_v63 }
 0x655   :  { %v1653_v27 = vperm.slane %v1652_v56, 1 }
 0x657   :  { %v1654_v60 = vmul.f32 %v1653_v27, %v1631_v5 }
 0x659   :  { %v1656_v29 = vadd.f32 %v1655_v28, %v1654_v60 }
 0x65b   :  { %1686 = vmatpush.msra.mxu3 %v1656_v29 }
 0x65c   :  { %1804 = vmatmul.msk.f32.vlgmr.msra.gmra.mxu3 %vm1667_vm1, %v1666_v30 }
 0x6df   :  { %v1688_v34 = vpop.f32.mrf.mxu3 }
 0x6e0   :  { %1805 = vmatmul.msk.f32.vlgmr.msrb.gmra.mxu0 %vm1615_vm12, %v1688_v34 }
 0x75d   :  { %v1712_v42 = vpop.f32.mrf.mxu0 }
 0x75e   :  { %v1713_v46 = vadd.f32 %v1812_v7, %v1712_v42 }
 0x760   :  { %1716 = vst.msk [vmem:[#allocation2] sm:$0x3] %vm1715_vm2, %v1713_v46 }
 0x761   :  { %1727 = dma.vmem_to_hbm [thread:$0]  %s1723_s22, 32, %s1725_s9, [#allocation3]  }
 0x762   :  { %1849 = dma.done.wait [#allocation3], 32  }
 0x763   :  { %1850 = vsyncadd [#allocation3], 4294967264 }
 0x764   :  { %1732 = vsyncpa [#allocation3], 1 }

</bundles_post_ra>
